<compile_context>
chip_gen: v6e
topology: v6e:2x2x1
jax: 0.10.0
libtpu: 0.0.40
codegen_flags: <defaults>
</compile_context>

<pallas_src>
import functools

import jax
import jax.numpy as jnp
from jax import lax
from jax.experimental import pallas as pl
from jax.experimental.pallas import tpu as pltpu

# ------------------------------------------------------------------
# Config (mirrors `conf` in the PyTorch module, at small test sizes)
# ------------------------------------------------------------------
VOCAB_SZ = 64
WORD_DIM = 32          # conf.word_dimension
ASPECT_DIM = 8         # conf.aspect_dimension
FILTERS_NUM = 16       # conf.filters_num
KERNEL_SIZE = 3        # conf.kernel_size
EMBEDDING_DIM = 16     # conf.embedding_dim
NUM_NEG = 2            # conf.num_negative_reviews
NUM_USERS = 10         # conf.num_users
NUM_ITEMS = 12         # conf.num_items
FM_DIM = 2 * EMBEDDING_DIM + 2 * ASPECT_DIM   # dim = 48
FM_K = 10


# ------------------------------------------------------------------
# Single fused Pallas kernel
# ------------------------------------------------------------------
def _fused_forward_kernel(
        u_ref, i_ref, ew_ref, ewv_ref, uh_ref, ih_ref, bu_ref, bi_ref, lab_ref,
        cwu_ref, cbu_ref, cwi_ref, cbi_ref, fwu_ref, fbu_ref, fwi_ref, fbi_ref,
        mwt_ref, wwt_ref, wb_ref, twt_ref, fcw_ref, fcb_ref, fmv_ref,
        pred_ref, rl_ref, zs_ref, rs_ref,
        pbuf,
        *, batch, doc_len, n_rev, rev_len, ksize, emb, n_asp):
    """Fused DeepCoNN + aspect attention + history aggregation + FM head.

    u_ref/i_ref: (B*Ld, D) flattened doc embeddings; ew_ref: (R*Lp, D);
    ewv_ref: (R*D, Lp) raw torch .view(R, D, L) reinterpretation;
    uh_ref/ih_ref: (B, R) densified histories; bu/bi/lab: (B, 1);
    cw*: (K, D, F); cb*: (1, F); fw*: (F, E); fb*: (1, E);
    mwt: (D, D); wwt: (D, A); wb: (1, A); twt: (A, D);
    fcw: (FM_DIM, 1); fcb: (1, 1); fmv: (FM_DIM, FM_K).
    Outputs: pred/rl (B, 1); zs/rs (R, D).
    Scratch: pbuf (B, F) max-pool rows.
    """
    f32 = jnp.float32
    t_out = doc_len - ksize + 1
    nvalid = batch * doc_len - ksize + 1

    # ---------------- DeepCoNN text-CNN (batched over the whole batch) -------
    def conv_branch(x_ref, cw_ref, cb_ref, fw_ref, fb_ref):
        x = x_ref[...]                        # (B*Ld, D) single VMEM load
        cw = cw_ref[...]                      # (K, D, F)
        # one batched MXU matmul per conv tap; windows that straddle document
        # boundaries are computed but excluded by the per-example max-pool.
        acc = jnp.dot(x[0:nvalid, :], cw[0], preferred_element_type=f32)
        for k in range(1, ksize):
            acc = acc + jnp.dot(x[k:k + nvalid, :], cw[k],
                                preferred_element_type=f32)
        acc = jnp.maximum(acc + cb_ref[...], 0.0)          # bias + ReLU
        # per-example global max-pool over valid window positions
        for b in range(batch):
            pbuf[b:b + 1, :] = jnp.max(
                acc[b * doc_len:b * doc_len + t_out, :], axis=0, keepdims=True)
        # batched fc over all examples at once -> (B, E)
        return (jnp.dot(pbuf[...], fw_ref[...], preferred_element_type=f32)
                + fb_ref[...])

    u_fea = conv_branch(u_ref, cwu_ref, cbu_ref, fwu_ref, fbu_ref)   # (B, E)
    i_fea = conv_branch(i_ref, cwi_ref, cbi_ref, fwi_ref, fbi_ref)   # (B, E)

    # ---------------- ABAE aspect attention ----------------------------------
    ew = ew_ref[...]                                                  # (R*L, D)
    ewv = ewv_ref[...]                                                # (R*D, L)
    word_dim = ew.shape[1]
    # transform_M applied to every word of every review in ONE batched matmul
    m = jnp.dot(ew, mwt_ref[...], preferred_element_type=f32)        # (R*L, D)
    for r in range(n_rev):                    # tiny per-review work, unrolled
        e_w_r = ew[r * rev_len:(r + 1) * rev_len, :]                  # (L, D)
        y_s = jnp.mean(e_w_r, axis=0, keepdims=True)                  # (1, D)
        m_r = m[r * rev_len:(r + 1) * rev_len, :]                     # (L, D)
        dx = lax.dot_general(y_s, m_r, (((1,), (1,)), ((), ())),
                             preferred_element_type=f32)              # (1, L)
        dx = dx - jnp.max(dx, axis=1, keepdims=True)
        ex = jnp.exp(dx)
        ax = ex / jnp.sum(ex, axis=1, keepdims=True)                  # softmax
        # z_s[d] = sum_l e_w.view(D, L)[d, l] * ax[l]   (raw torch .view trick)
        ewv_r = ewv[r * word_dim:(r + 1) * word_dim, :]               # (D, L)
        zs_ref[r:r + 1, :] = lax.dot_general(
            ax, ewv_r, (((1,), (1,)), ((), ())), preferred_element_type=f32)

    z_all = zs_ref[...]                                               # (R, D)
    p_t = (jnp.dot(z_all, wwt_ref[...], preferred_element_type=f32)
           + wb_ref[...])                                             # (R, A)
    rs_ref[...] = jnp.dot(p_t, twt_ref[...], preferred_element_type=f32)

    # (densified) torch.sparse.mm aggregation
    u_asp = jnp.dot(uh_ref[...], p_t, preferred_element_type=f32)     # (B, A)
    i_asp = jnp.dot(ih_ref[...], p_t, preferred_element_type=f32)     # (B, A)

    # ---------------- FM head + per-example squared error --------------------
    # Segment-wise: x = [u_fea | i_fea | u_asp | i_asp] is never materialized;
    # row-blocks of fc.weight / fm_V are contracted per segment and summed.
    segs = ((u_fea, 0, emb),
            (i_fea, emb, 2 * emb),
            (u_asp, 2 * emb, 2 * emb + n_asp),
            (i_asp, 2 * emb + n_asp, 2 * emb + 2 * n_asp))
    lin = fcb_ref[...]                                                # (1, 1)
    i1 = jnp.zeros((batch, fmv_ref.shape[1]), f32)                    # x @ V
    i2 = jnp.zeros((batch, fmv_ref.shape[1]), f32)                    # x^2 @ V^2
    for seg, lo, hi in segs:
        w = fcw_ref[lo:hi, :]                                         # (S, 1)
        v = fmv_ref[lo:hi, :]                                         # (S, K)
        lin = lin + jnp.dot(seg, w, preferred_element_type=f32)
        i1 = i1 + jnp.dot(seg, v, preferred_element_type=f32)
        i2 = i2 + jnp.dot(seg * seg, v * v, preferred_element_type=f32)
    fm_out = (0.5 * jnp.sum(i1 * i1 - i2, axis=1, keepdims=True)
              + lin + bu_ref[...] + bi_ref[...])                      # (B, 1)
    pred_ref[...] = fm_out
    rl_ref[...] = (fm_out - lab_ref[...]) ** 2


# ------------------------------------------------------------------
# Pallas wrapper
# ------------------------------------------------------------------
def fused_forward_pallas(u_emb, i_emb, e_w, user_hist, item_hist,
                         b_u, b_i, label_col, p):
    B, Ld, D = u_emb.shape
    R, Lp, _ = e_w.shape
    K, F, E, A = KERNEL_SIZE, FILTERS_NUM, EMBEDDING_DIM, ASPECT_DIM

    # free XLA-side reinterpretations (no transposes)
    u2 = u_emb.reshape(B * Ld, D)
    i2 = i_emb.reshape(B * Ld, D)
    ew2 = e_w.reshape(R * Lp, D)
    # torch `.view(R, D, L)` raw reinterpretation (NOT a transpose), flattened
    ewv2 = e_w.reshape(R * D, Lp)

    cw_u = jnp.transpose(p["user_cnn_w"][:, 0], (1, 2, 0))   # (K, D, F)
    cw_i = jnp.transpose(p["item_cnn_w"][:, 0], (1, 2, 0))
    cb_u = p["user_cnn_b"].reshape(1, F)
    cb_i = p["item_cnn_b"].reshape(1, F)
    fw_u = p["user_fc_w"].T                                  # (F, E)
    fw_i = p["item_fc_w"].T
    fb_u = p["user_fc_b"].reshape(1, E)
    fb_i = p["item_fc_b"].reshape(1, E)
    mwt = p["M_w"].T                                         # (D, D)
    wwt = p["W_w"].T                                         # (D, A)
    wb = p["W_b"].reshape(1, A)
    twt = p["T_w"].T                                         # (A, D)
    fcw = p["fc_w"].T                                        # (dim, 1)
    fcb = p["fc_b"].reshape(1, 1)

    def full(shp):
        return pl.BlockSpec(shp, lambda i: (0,) * len(shp))

    kernel = functools.partial(_fused_forward_kernel, batch=B, doc_len=Ld,
                               n_rev=R, rev_len=Lp, ksize=K, emb=E, n_asp=A)

    pred, rl, z_s, r_s = pl.pallas_call(
        kernel,
        out_shape=(jax.ShapeDtypeStruct((B, 1), jnp.float32),
                   jax.ShapeDtypeStruct((B, 1), jnp.float32),
                   jax.ShapeDtypeStruct((R, D), jnp.float32),
                   jax.ShapeDtypeStruct((R, D), jnp.float32)),
        grid=(1,),
        in_specs=[
            full((B * Ld, D)), full((B * Ld, D)),
            full((R * Lp, D)), full((R * D, Lp)),
            full((B, R)), full((B, R)),
            full((B, 1)), full((B, 1)), full((B, 1)),
            full((K, D, F)), full((1, F)), full((K, D, F)), full((1, F)),
            full((F, E)), full((1, E)), full((F, E)), full((1, E)),
            full((D, D)), full((D, A)), full((1, A)), full((A, D)),
            full((FM_DIM, 1)), full((1, 1)), full((FM_DIM, FM_K)),
        ],
        out_specs=(full((B, 1)), full((B, 1)), full((R, D)), full((R, D))),
        scratch_shapes=[pltpu.VMEM((B, F), jnp.float32)],    # max-pool rows
        compiler_params=pltpu.CompilerParams(
            dimension_semantics=("arbitrary",)),
    )(u2, i2, ew2, ewv2, user_hist, item_hist, b_u, b_i, label_col,
      cw_u, cb_u, cw_i, cb_i, fw_u, fb_u, fw_i, fb_i,
      mwt, wwt, wb, twt, fcw, fcb, p["fm_V"])
    return pred, rl, z_s, r_s


# ------------------------------------------------------------------
# Parameters (deterministic, shapes match the PyTorch __init__)
# ------------------------------------------------------------------
def init_params(key):
    ks = jax.random.split(key, 16)
    p = {}
    p["word_embedding"] = jax.random.normal(ks[0], (VOCAB_SZ, WORD_DIM)) * 0.1
    p["user_word_embs"] = jax.random.normal(ks[1], (VOCAB_SZ, WORD_DIM)) * 0.1
    p["item_word_embs"] = jax.random.normal(ks[2], (VOCAB_SZ, WORD_DIM)) * 0.1
    # transform_M: Linear(D, D, bias=False)  weight (D, D)
    p["M_w"] = jax.random.normal(ks[3], (WORD_DIM, WORD_DIM)) * 0.1
    # transform_W: Linear(D, A)              weight (A, D), bias (A,)
    p["W_w"] = jax.random.normal(ks[4], (ASPECT_DIM, WORD_DIM)) * 0.1
    p["W_b"] = jnp.full((ASPECT_DIM,), 0.05, jnp.float32)
    # transform_T: Linear(A, D, bias=False)  weight (D, A)
    p["T_w"] = jax.random.normal(ks[5], (WORD_DIM, ASPECT_DIM)) * 0.1
    # CNNs: weight (F, 1, K, D) xavier-ish, bias 0.1
    p["user_cnn_w"] = jax.random.normal(
        ks[6], (FILTERS_NUM, 1, KERNEL_SIZE, WORD_DIM)) * 0.1
    p["user_cnn_b"] = jnp.full((FILTERS_NUM,), 0.1, jnp.float32)
    p["item_cnn_w"] = jax.random.normal(
        ks[7], (FILTERS_NUM, 1, KERNEL_SIZE, WORD_DIM)) * 0.1
    p["item_cnn_b"] = jnp.full((FILTERS_NUM,), 0.1, jnp.float32)
    # fc linears: weight (E, F) ~ U(-0.1, 0.1), bias 0.1
    p["user_fc_w"] = jax.random.uniform(ks[8], (EMBEDDING_DIM, FILTERS_NUM),
                                        minval=-0.1, maxval=0.1)
    p["user_fc_b"] = jnp.full((EMBEDDING_DIM,), 0.1, jnp.float32)
    p["item_fc_w"] = jax.random.uniform(ks[9], (EMBEDDING_DIM, FILTERS_NUM),
                                        minval=-0.1, maxval=0.1)
    p["item_fc_b"] = jnp.full((EMBEDDING_DIM,), 0.1, jnp.float32)
    # fc: Linear(dim, 1) ~ U(-0.05, 0.05), bias 0
    p["fc_w"] = jax.random.uniform(ks[10], (1, FM_DIM), minval=-0.05, maxval=0.05)
    p["fc_b"] = jnp.zeros((1,), jnp.float32)
    p["fm_V"] = jax.random.uniform(ks[11], (FM_DIM, FM_K), minval=-0.05, maxval=0.05)
    p["b_users"] = jax.random.uniform(ks[12], (NUM_USERS, 1), minval=0.0, maxval=0.1)
    p["b_items"] = jax.random.uniform(ks[13], (NUM_ITEMS, 1), minval=0.0, maxval=0.1)
    return p


# ------------------------------------------------------------------
# Forward pass (glue in JAX, the whole hot path in one Pallas kernel)
# ------------------------------------------------------------------
def _l2n(x, axis):
    # F.normalize(p=2): x / max(||x||_2, eps)
    return x / jnp.maximum(jnp.linalg.norm(x, ord=2, axis=axis, keepdims=True), 1e-12)


def forward(p, pos_review, neg_review, user, item, label,
            user_histor_index, user_histor_value,
            item_histor_index, item_histor_value, user_doc, item_doc):
    B = label.shape[0]
    R, _ = pos_review.shape

    # ---------------- embedding gathers (XLA glue) ----------------
    u_emb = p["user_word_embs"][user_doc]         # (B, Ld, D)
    i_emb = p["item_word_embs"][item_doc]
    e_w = p["word_embedding"][pos_review]         # (R, Lp, D)
    neg_emb = p["word_embedding"][neg_review]     # (R*NUM_NEG, Ln, D)
    z_n = jnp.mean(neg_emb, axis=1)               # (R*NUM_NEG, D)

    # torch.sparse.FloatTensor densified via scatter-add (duplicates sum)
    user_hist = jnp.zeros((B, R), jnp.float32).at[
        user_histor_index[0], user_histor_index[1]].add(user_histor_value)
    item_hist = jnp.zeros((B, R), jnp.float32).at[
        item_histor_index[0], item_histor_index[1]].add(item_histor_value)

    b_u = p["b_users"][user]                      # (B, 1)
    b_i = p["b_items"][item]

    # ---------------- fused Pallas kernel ----------------
    pred, rating_loss, z_s, r_s = fused_forward_pallas(
        u_emb, i_emb, e_w, user_hist, item_hist, b_u, b_i,
        label.reshape(-1, 1), p)

    # ---------------- ABAE / regularization losses (tiny, XLA glue) ----------
    c1 = jnp.sum(_l2n(r_s, 1) * _l2n(z_s, 1), axis=-1, keepdims=True)        # (R, 1)
    c1 = jnp.tile(c1, (1, NUM_NEG)).reshape(-1)                              # (R*NUM_NEG,)
    c2 = jnp.sum(_l2n(z_n.reshape(R, NUM_NEG, WORD_DIM), 2) *
                 _l2n(r_s.reshape(R, 1, WORD_DIM), 2), axis=-1).reshape(-1)
    # MarginRankingLoss(margin=1, y=+1, reduction='none')
    abae_out_loss = jnp.maximum(0.0, 1.0 - (c1 - c2))
    J_loss = jnp.mean(abae_out_loss)
    t_norm = _l2n(p["T_w"], 0)                                               # normalize dim=0
    gram = t_norm.T @ t_norm
    U_loss = jnp.mean((gram - jnp.eye(ASPECT_DIM, dtype=jnp.float32)) ** 2)

    prediction = pred[:, 0]
    rating_loss = rating_loss[:, 0]               # mse_func_1 (reduction='none')
    mse_loss = jnp.mean(rating_loss)              # mse_func_2
    obj_loss = mse_loss + 0.001 * J_loss + 0.001 * U_loss
    return obj_loss, rating_loss, abae_out_loss, prediction


# ------------------------------------------------------------------
# Main
# ------------------------------------------------------------------
if __name__ == "__main__":
    key = jax.random.PRNGKey(0)
    kp, kd = jax.random.split(key)
    params = init_params(kp)

    B = 4        # user-item interactions (label.shape[0])
    R = 6        # positive reviews in batch (w.shape[0])
    L_POS = 8
    L_NEG = 8
    DOC_LEN = 16

    ks = jax.random.split(kd, 12)
    pos_review = jax.random.randint(ks[0], (R, L_POS), 0, VOCAB_SZ, dtype=jnp.int32)
    neg_review = jax.random.randint(ks[1], (R * NUM_NEG, L_NEG), 0, VOCAB_SZ,
                                    dtype=jnp.int32)
    user = jax.random.randint(ks[2], (B,), 0, NUM_USERS, dtype=jnp.int32)
    item = jax.random.randint(ks[3], (B,), 0, NUM_ITEMS, dtype=jnp.int32)
    label = jax.random.uniform(ks[4], (B,), minval=1.0, maxval=5.0)
    user_doc = jax.random.randint(ks[5], (B, DOC_LEN), 0, VOCAB_SZ, dtype=jnp.int32)
    item_doc = jax.random.randint(ks[6], (B, DOC_LEN), 0, VOCAB_SZ, dtype=jnp.int32)
    # sparse COO (B, R) user/item -> review-history incidence
    user_histor_index = jnp.array([[0, 0, 1, 1, 2, 2, 3, 3],
                                   [0, 1, 2, 3, 4, 5, 0, 2]], dtype=jnp.int32)
    user_histor_value = jax.random.uniform(ks[7], (8,), minval=0.1, maxval=1.0)
    item_histor_index = jnp.array([[0, 1, 1, 2, 3, 3],
                                   [5, 0, 4, 1, 2, 3]], dtype=jnp.int32)
    item_histor_value = jax.random.uniform(ks[8], (6,), minval=0.1, maxval=1.0)

    fwd = jax.jit(functools.partial(forward, params))
    obj_loss, rating_loss, abae_out_loss, prediction = fwd(
        pos_review, neg_review, user, item, label,
        user_histor_index, user_histor_value,
        item_histor_index, item_histor_value, user_doc, item_doc)
    jax.block_until_ready((obj_loss, rating_loss, abae_out_loss, prediction))
    print("KERNEL_OK")
</pallas_src>

<mosaic_0001>
module attributes {stable_mosaic.version = 11 : i64} {
  func.func private @main(%arg0: i32) attributes {dimension_semantics = [#tpu.dimension_semantics<core_parallel>], iteration_bounds = array<i64: 2>, tpu.core_type = #tpu.core_type<sc_scalar_subcore>, window_params = []} {
    return
  }
}

module attributes {stable_mosaic.version = 11 : i64} {
  func.func private @main(%arg0: i32) attributes {dimension_semantics = [#tpu.dimension_semantics<core_parallel>], iteration_bounds = array<i64: 2>, tpu.core_type = #tpu.core_type<sc_scalar_subcore>, window_params = []} {
    return
  }
}

module attributes {stable_mosaic.version = 11 : i64} {
  func.func @_fused_forward_kernel(%arg0: i32, %arg1: memref<64x32xf32, #tpu.memory_space<vmem>>, %arg2: memref<64x32xf32, #tpu.memory_space<vmem>>, %arg3: memref<48x32xf32, #tpu.memory_space<vmem>>, %arg4: memref<192x8xf32, #tpu.memory_space<vmem>>, %arg5: memref<4x6xf32, #tpu.memory_space<vmem>>, %arg6: memref<4x6xf32, #tpu.memory_space<vmem>>, %arg7: memref<4x1xf32, #tpu.memory_space<vmem>>, %arg8: memref<4x1xf32, #tpu.memory_space<vmem>>, %arg9: memref<4x1xf32, #tpu.memory_space<vmem>>, %arg10: memref<3x32x16xf32, #tpu.memory_space<vmem>>, %arg11: memref<1x16xf32, #tpu.memory_space<vmem>>, %arg12: memref<3x32x16xf32, #tpu.memory_space<vmem>>, %arg13: memref<1x16xf32, #tpu.memory_space<vmem>>, %arg14: memref<16x16xf32, #tpu.memory_space<vmem>>, %arg15: memref<1x16xf32, #tpu.memory_space<vmem>>, %arg16: memref<16x16xf32, #tpu.memory_space<vmem>>, %arg17: memref<1x16xf32, #tpu.memory_space<vmem>>, %arg18: memref<32x32xf32, #tpu.memory_space<vmem>>, %arg19: memref<32x8xf32, #tpu.memory_space<vmem>>, %arg20: memref<1x8xf32, #tpu.memory_space<vmem>>, %arg21: memref<8x32xf32, #tpu.memory_space<vmem>>, %arg22: memref<48x1xf32, #tpu.memory_space<vmem>>, %arg23: memref<1x1xf32, #tpu.memory_space<vmem>>, %arg24: memref<48x10xf32, #tpu.memory_space<vmem>>, %arg25: memref<4x1xf32, #tpu.memory_space<vmem>>, %arg26: memref<4x1xf32, #tpu.memory_space<vmem>>, %arg27: memref<6x32xf32, #tpu.memory_space<vmem>>, %arg28: memref<6x32xf32, #tpu.memory_space<vmem>>, %arg29: memref<4x16xf32, #tpu.memory_space<vmem>>) attributes {dimension_semantics = [#tpu.dimension_semantics<arbitrary>], iteration_bounds = array<i64: 1>, scalar_prefetch = 0 : i64, scratch_operands = 1 : i64, tpu.core_type = #tpu.core_type<tc>, window_params = [{pipeline_mode = #tpu.pipeline_mode<synchronous>, transform_indices = @transform_0, window_bounds = array<i64: 64, 32>}, {pipeline_mode = #tpu.pipeline_mode<synchronous>, transform_indices = @transform_1, window_bounds = array<i64: 64, 32>}, {pipeline_mode = #tpu.pipeline_mode<synchronous>, transform_indices = @transform_2, window_bounds = array<i64: 48, 32>}, {pipeline_mode = #tpu.pipeline_mode<synchronous>, transform_indices = @transform_3, window_bounds = array<i64: 192, 8>}, {pipeline_mode = #tpu.pipeline_mode<synchronous>, transform_indices = @transform_4, window_bounds = array<i64: 4, 6>}, {pipeline_mode = #tpu.pipeline_mode<synchronous>, transform_indices = @transform_5, window_bounds = array<i64: 4, 6>}, {pipeline_mode = #tpu.pipeline_mode<synchronous>, transform_indices = @transform_6, window_bounds = array<i64: 4, 1>}, {pipeline_mode = #tpu.pipeline_mode<synchronous>, transform_indices = @transform_7, window_bounds = array<i64: 4, 1>}, {pipeline_mode = #tpu.pipeline_mode<synchronous>, transform_indices = @transform_8, window_bounds = array<i64: 4, 1>}, {pipeline_mode = #tpu.pipeline_mode<synchronous>, transform_indices = @transform_9, window_bounds = array<i64: 3, 32, 16>}, {pipeline_mode = #tpu.pipeline_mode<synchronous>, transform_indices = @transform_10, window_bounds = array<i64: 1, 16>}, {pipeline_mode = #tpu.pipeline_mode<synchronous>, transform_indices = @transform_11, window_bounds = array<i64: 3, 32, 16>}, {pipeline_mode = #tpu.pipeline_mode<synchronous>, transform_indices = @transform_12, window_bounds = array<i64: 1, 16>}, {pipeline_mode = #tpu.pipeline_mode<synchronous>, transform_indices = @transform_13, window_bounds = array<i64: 16, 16>}, {pipeline_mode = #tpu.pipeline_mode<synchronous>, transform_indices = @transform_14, window_bounds = array<i64: 1, 16>}, {pipeline_mode = #tpu.pipeline_mode<synchronous>, transform_indices = @transform_15, window_bounds = array<i64: 16, 16>}, {pipeline_mode = #tpu.pipeline_mode<synchronous>, transform_indices = @transform_16, window_bounds = array<i64: 1, 16>}, {pipeline_mode = #tpu.pipeline_mode<synchronous>, transform_indices = @transform_17, window_bounds = array<i64: 32, 32>}, {pipeline_mode = #tpu.pipeline_mode<synchronous>, transform_indices = @transform_18, window_bounds = array<i64: 32, 8>}, {pipeline_mode = #tpu.pipeline_mode<synchronous>, transform_indices = @transform_19, window_bounds = array<i64: 1, 8>}, {pipeline_mode = #tpu.pipeline_mode<synchronous>, transform_indices = @transform_20, window_bounds = array<i64: 8, 32>}, {pipeline_mode = #tpu.pipeline_mode<synchronous>, transform_indices = @transform_21, window_bounds = array<i64: 48, 1>}, {pipeline_mode = #tpu.pipeline_mode<synchronous>, transform_indices = @transform_22, window_bounds = array<i64: 1, 1>}, {pipeline_mode = #tpu.pipeline_mode<synchronous>, transform_indices = @transform_23, window_bounds = array<i64: 48, 10>}, {pipeline_mode = #tpu.pipeline_mode<synchronous>, transform_indices = @transform_24, window_bounds = array<i64: 4, 1>}, {pipeline_mode = #tpu.pipeline_mode<synchronous>, transform_indices = @transform_25, window_bounds = array<i64: 4, 1>}, {pipeline_mode = #tpu.pipeline_mode<synchronous>, transform_indices = @transform_26, window_bounds = array<i64: 6, 32>}, {pipeline_mode = #tpu.pipeline_mode<synchronous>, transform_indices = @transform_27, window_bounds = array<i64: 6, 32>}]} {
    %c0 = arith.constant 0 : index
    %c0_0 = arith.constant 0 : index
    %0 = vector.load %arg1[%c0, %c0_0] : memref<64x32xf32, #tpu.memory_space<vmem>>, vector<64x32xf32>
    %c0_1 = arith.constant 0 : index
    %c0_2 = arith.constant 0 : index
    %c0_3 = arith.constant 0 : index
    %1 = vector.load %arg10[%c0_1, %c0_2, %c0_3] : memref<3x32x16xf32, #tpu.memory_space<vmem>>, vector<3x32x16xf32>
    %2 = vector.extract_strided_slice %0 {offsets = [0, 0], sizes = [62, 32], strides = [1, 1]} : vector<64x32xf32> to vector<62x32xf32>
    %3 = vector.extract_strided_slice %1 {offsets = [0, 0, 0], sizes = [1, 32, 16], strides = [1, 1, 1]} : vector<3x32x16xf32> to vector<1x32x16xf32>
    %4 = vector.shape_cast %3 : vector<1x32x16xf32> to vector<32x16xf32>
    %cst = arith.constant dense<0.000000e+00> : vector<62x16xf32>
    %5 = tpu.matmul %2, %4, %cst {dimension_numbers = #tpu.dot_dimension_numbers<[1], [0], [0], [1], [0, 0, 1, 1], [], []>} : vector<62x32xf32>, vector<32x16xf32>, vector<62x16xf32> -> vector<62x16xf32>
    %6 = vector.extract_strided_slice %0 {offsets = [1, 0], sizes = [62, 32], strides = [1, 1]} : vector<64x32xf32> to vector<62x32xf32>
    %7 = vector.extract_strided_slice %1 {offsets = [1, 0, 0], sizes = [1, 32, 16], strides = [1, 1, 1]} : vector<3x32x16xf32> to vector<1x32x16xf32>
    %8 = vector.shape_cast %7 : vector<1x32x16xf32> to vector<32x16xf32>
    %cst_4 = arith.constant dense<0.000000e+00> : vector<62x16xf32>
    %9 = tpu.matmul %6, %8, %cst_4 {dimension_numbers = #tpu.dot_dimension_numbers<[1], [0], [0], [1], [0, 0, 1, 1], [], []>} : vector<62x32xf32>, vector<32x16xf32>, vector<62x16xf32> -> vector<62x16xf32>
    %10 = arith.addf %5, %9 : vector<62x16xf32>
    %11 = vector.extract_strided_slice %0 {offsets = [2, 0], sizes = [62, 32], strides = [1, 1]} : vector<64x32xf32> to vector<62x32xf32>
    %12 = vector.extract_strided_slice %1 {offsets = [2, 0, 0], sizes = [1, 32, 16], strides = [1, 1, 1]} : vector<3x32x16xf32> to vector<1x32x16xf32>
    %13 = vector.shape_cast %12 : vector<1x32x16xf32> to vector<32x16xf32>
    %cst_5 = arith.constant dense<0.000000e+00> : vector<62x16xf32>
    %14 = tpu.matmul %11, %13, %cst_5 {dimension_numbers = #tpu.dot_dimension_numbers<[1], [0], [0], [1], [0, 0, 1, 1], [], []>} : vector<62x32xf32>, vector<32x16xf32>, vector<62x16xf32> -> vector<62x16xf32>
    %15 = arith.addf %10, %14 : vector<62x16xf32>
    %c0_6 = arith.constant 0 : index
    %c0_7 = arith.constant 0 : index
    %16 = vector.load %arg11[%c0_6, %c0_7] : memref<1x16xf32, #tpu.memory_space<vmem>>, vector<1x16xf32>
    %17 = vector.broadcast %16 : vector<1x16xf32> to vector<62x16xf32>
    %18 = arith.addf %15, %17 : vector<62x16xf32>
    %cst_8 = arith.constant 0.000000e+00 : f32
    %19 = vector.broadcast %cst_8 : f32 to vector<62x16xf32>
    %20 = arith.maximumf %18, %19 : vector<62x16xf32>
    %21 = vector.extract_strided_slice %20 {offsets = [0, 0], sizes = [14, 16], strides = [1, 1]} : vector<62x16xf32> to vector<14x16xf32>
    %cst_9 = arith.constant dense<0xFF800000> : vector<16xf32>
    %22 = vector.multi_reduction <maximumf>, %21, %cst_9 [0] : vector<14x16xf32> to vector<16xf32>
    %23 = vector.shape_cast %22 : vector<16xf32> to vector<1x16xf32>
    %c0_10 = arith.constant 0 : index
    %c0_11 = arith.constant 0 : index
    %24 = vector.load %arg29[%c0_10, %c0_11] : memref<4x16xf32, #tpu.memory_space<vmem>>, vector<1x16xf32>
    tpu.vector_store %arg29[%c0_10, %c0_11], %23 {strides = array<i32>} : memref<4x16xf32, #tpu.memory_space<vmem>>, vector<1x16xf32>,
    %25 = vector.extract_strided_slice %20 {offsets = [16, 0], sizes = [14, 16], strides = [1, 1]} : vector<62x16xf32> to vector<14x16xf32>
    %cst_12 = arith.constant dense<0xFF800000> : vector<16xf32>
    %26 = vector.multi_reduction <maximumf>, %25, %cst_12 [0] : vector<14x16xf32> to vector<16xf32>
    %27 = vector.shape_cast %26 : vector<16xf32> to vector<1x16xf32>
    %c1 = arith.constant 1 : index
    %c0_13 = arith.constant 0 : index
    %28 = vector.load %arg29[%c1, %c0_13] : memref<4x16xf32, #tpu.memory_space<vmem>>, vector<1x16xf32>
    tpu.vector_store %arg29[%c1, %c0_13], %27 {strides = array<i32>} : memref<4x16xf32, #tpu.memory_space<vmem>>, vector<1x16xf32>,
    %29 = vector.extract_strided_slice %20 {offsets = [32, 0], sizes = [14, 16], strides = [1, 1]} : vector<62x16xf32> to vector<14x16xf32>
    %cst_14 = arith.constant dense<0xFF800000> : vector<16xf32>
    %30 = vector.multi_reduction <maximumf>, %29, %cst_14 [0] : vector<14x16xf32> to vector<16xf32>
    %31 = vector.shape_cast %30 : vector<16xf32> to vector<1x16xf32>
    %c2 = arith.constant 2 : index
    %c0_15 = arith.constant 0 : index
    %32 = vector.load %arg29[%c2, %c0_15] : memref<4x16xf32, #tpu.memory_space<vmem>>, vector<1x16xf32>
    tpu.vector_store %arg29[%c2, %c0_15], %31 {strides = array<i32>} : memref<4x16xf32, #tpu.memory_space<vmem>>, vector<1x16xf32>,
    %33 = vector.extract_strided_slice %20 {offsets = [48, 0], sizes = [14, 16], strides = [1, 1]} : vector<62x16xf32> to vector<14x16xf32>
    %cst_16 = arith.constant dense<0xFF800000> : vector<16xf32>
    %34 = vector.multi_reduction <maximumf>, %33, %cst_16 [0] : vector<14x16xf32> to vector<16xf32>
    %35 = vector.shape_cast %34 : vector<16xf32> to vector<1x16xf32>
    %c3 = arith.constant 3 : index
    %c0_17 = arith.constant 0 : index
    %36 = vector.load %arg29[%c3, %c0_17] : memref<4x16xf32, #tpu.memory_space<vmem>>, vector<1x16xf32>
    tpu.vector_store %arg29[%c3, %c0_17], %35 {strides = array<i32>} : memref<4x16xf32, #tpu.memory_space<vmem>>, vector<1x16xf32>,
    %c0_18 = arith.constant 0 : index
    %c0_19 = arith.constant 0 : index
    %37 = vector.load %arg29[%c0_18, %c0_19] : memref<4x16xf32, #tpu.memory_space<vmem>>, vector<4x16xf32>
    %c0_20 = arith.constant 0 : index
    %c0_21 = arith.constant 0 : index
    %38 = vector.load %arg14[%c0_20, %c0_21] : memref<16x16xf32, #tpu.memory_space<vmem>>, vector<16x16xf32>
    %cst_22 = arith.constant dense<0.000000e+00> : vector<4x16xf32>
    %39 = tpu.matmul %37, %38, %cst_22 {dimension_numbers = #tpu.dot_dimension_numbers<[1], [0], [0], [1], [0, 0, 1, 1], [], []>} : vector<4x16xf32>, vector<16x16xf32>, vector<4x16xf32> -> vector<4x16xf32>
    %c0_23 = arith.constant 0 : index
    %c0_24 = arith.constant 0 : index
    %40 = vector.load %arg15[%c0_23, %c0_24] : memref<1x16xf32, #tpu.memory_space<vmem>>, vector<1x16xf32>
    %41 = vector.broadcast %40 : vector<1x16xf32> to vector<4x16xf32>
    %42 = arith.addf %39, %41 : vector<4x16xf32>
    %c0_25 = arith.constant 0 : index
    %c0_26 = arith.constant 0 : index
    %43 = vector.load %arg2[%c0_25, %c0_26] : memref<64x32xf32, #tpu.memory_space<vmem>>, vector<64x32xf32>
    %c0_27 = arith.constant 0 : index
    %c0_28 = arith.constant 0 : index
    %c0_29 = arith.constant 0 : index
    %44 = vector.load %arg12[%c0_27, %c0_28, %c0_29] : memref<3x32x16xf32, #tpu.memory_space<vmem>>, vector<3x32x16xf32>
    %45 = vector.extract_strided_slice %43 {offsets = [0, 0], sizes = [62, 32], strides = [1, 1]} : vector<64x32xf32> to vector<62x32xf32>
    %46 = vector.extract_strided_slice %44 {offsets = [0, 0, 0], sizes = [1, 32, 16], strides = [1, 1, 1]} : vector<3x32x16xf32> to vector<1x32x16xf32>
    %47 = vector.shape_cast %46 : vector<1x32x16xf32> to vector<32x16xf32>
    %cst_30 = arith.constant dense<0.000000e+00> : vector<62x16xf32>
    %48 = tpu.matmul %45, %47, %cst_30 {dimension_numbers = #tpu.dot_dimension_numbers<[1], [0], [0], [1], [0, 0, 1, 1], [], []>} : vector<62x32xf32>, vector<32x16xf32>, vector<62x16xf32> -> vector<62x16xf32>
    %49 = vector.extract_strided_slice %43 {offsets = [1, 0], sizes = [62, 32], strides = [1, 1]} : vector<64x32xf32> to vector<62x32xf32>
    %50 = vector.extract_strided_slice %44 {offsets = [1, 0, 0], sizes = [1, 32, 16], strides = [1, 1, 1]} : vector<3x32x16xf32> to vector<1x32x16xf32>
    %51 = vector.shape_cast %50 : vector<1x32x16xf32> to vector<32x16xf32>
    %cst_31 = arith.constant dense<0.000000e+00> : vector<62x16xf32>
    %52 = tpu.matmul %49, %51, %cst_31 {dimension_numbers = #tpu.dot_dimension_numbers<[1], [0], [0], [1], [0, 0, 1, 1], [], []>} : vector<62x32xf32>, vector<32x16xf32>, vector<62x16xf32> -> vector<62x16xf32>
    %53 = arith.addf %48, %52 : vector<62x16xf32>
    %54 = vector.extract_strided_slice %43 {offsets = [2, 0], sizes = [62, 32], strides = [1, 1]} : vector<64x32xf32> to vector<62x32xf32>
    %55 = vector.extract_strided_slice %44 {offsets = [2, 0, 0], sizes = [1, 32, 16], strides = [1, 1, 1]} : vector<3x32x16xf32> to vector<1x32x16xf32>
    %56 = vector.shape_cast %55 : vector<1x32x16xf32> to vector<32x16xf32>
    %cst_32 = arith.constant dense<0.000000e+00> : vector<62x16xf32>
    %57 = tpu.matmul %54, %56, %cst_32 {dimension_numbers = #tpu.dot_dimension_numbers<[1], [0], [0], [1], [0, 0, 1, 1], [], []>} : vector<62x32xf32>, vector<32x16xf32>, vector<62x16xf32> -> vector<62x16xf32>
    %58 = arith.addf %53, %57 : vector<62x16xf32>
    %c0_33 = arith.constant 0 : index
    %c0_34 = arith.constant 0 : index
    %59 = vector.load %arg13[%c0_33, %c0_34] : memref<1x16xf32, #tpu.memory_space<vmem>>, vector<1x16xf32>
    %60 = vector.broadcast %59 : vector<1x16xf32> to vector<62x16xf32>
    %61 = arith.addf %58, %60 : vector<62x16xf32>
    %cst_35 = arith.constant 0.000000e+00 : f32
    %62 = vector.broadcast %cst_35 : f32 to vector<62x16xf32>
    %63 = arith.maximumf %61, %62 : vector<62x16xf32>
    %64 = vector.extract_strided_slice %63 {offsets = [0, 0], sizes = [14, 16], strides = [1, 1]} : vector<62x16xf32> to vector<14x16xf32>
    %cst_36 = arith.constant dense<0xFF800000> : vector<16xf32>
    %65 = vector.multi_reduction <maximumf>, %64, %cst_36 [0] : vector<14x16xf32> to vector<16xf32>
    %66 = vector.shape_cast %65 : vector<16xf32> to vector<1x16xf32>
    %c0_37 = arith.constant 0 : index
    %c0_38 = arith.constant 0 : index
    %67 = vector.load %arg29[%c0_37, %c0_38] : memref<4x16xf32, #tpu.memory_space<vmem>>, vector<1x16xf32>
    tpu.vector_store %arg29[%c0_37, %c0_38], %66 {strides = array<i32>} : memref<4x16xf32, #tpu.memory_space<vmem>>, vector<1x16xf32>,
    %68 = vector.extract_strided_slice %63 {offsets = [16, 0], sizes = [14, 16], strides = [1, 1]} : vector<62x16xf32> to vector<14x16xf32>
    %cst_39 = arith.constant dense<0xFF800000> : vector<16xf32>
    %69 = vector.multi_reduction <maximumf>, %68, %cst_39 [0] : vector<14x16xf32> to vector<16xf32>
    %70 = vector.shape_cast %69 : vector<16xf32> to vector<1x16xf32>
    %c1_40 = arith.constant 1 : index
    %c0_41 = arith.constant 0 : index
    %71 = vector.load %arg29[%c1_40, %c0_41] : memref<4x16xf32, #tpu.memory_space<vmem>>, vector<1x16xf32>
    tpu.vector_store %arg29[%c1_40, %c0_41], %70 {strides = array<i32>} : memref<4x16xf32, #tpu.memory_space<vmem>>, vector<1x16xf32>,
    %72 = vector.extract_strided_slice %63 {offsets = [32, 0], sizes = [14, 16], strides = [1, 1]} : vector<62x16xf32> to vector<14x16xf32>
    %cst_42 = arith.constant dense<0xFF800000> : vector<16xf32>
    %73 = vector.multi_reduction <maximumf>, %72, %cst_42 [0] : vector<14x16xf32> to vector<16xf32>
    %74 = vector.shape_cast %73 : vector<16xf32> to vector<1x16xf32>
    %c2_43 = arith.constant 2 : index
    %c0_44 = arith.constant 0 : index
    %75 = vector.load %arg29[%c2_43, %c0_44] : memref<4x16xf32, #tpu.memory_space<vmem>>, vector<1x16xf32>
    tpu.vector_store %arg29[%c2_43, %c0_44], %74 {strides = array<i32>} : memref<4x16xf32, #tpu.memory_space<vmem>>, vector<1x16xf32>,
    %76 = vector.extract_strided_slice %63 {offsets = [48, 0], sizes = [14, 16], strides = [1, 1]} : vector<62x16xf32> to vector<14x16xf32>
    %cst_45 = arith.constant dense<0xFF800000> : vector<16xf32>
    %77 = vector.multi_reduction <maximumf>, %76, %cst_45 [0] : vector<14x16xf32> to vector<16xf32>
    %78 = vector.shape_cast %77 : vector<16xf32> to vector<1x16xf32>
    %c3_46 = arith.constant 3 : index
    %c0_47 = arith.constant 0 : index
    %79 = vector.load %arg29[%c3_46, %c0_47] : memref<4x16xf32, #tpu.memory_space<vmem>>, vector<1x16xf32>
    tpu.vector_store %arg29[%c3_46, %c0_47], %78 {strides = array<i32>} : memref<4x16xf32, #tpu.memory_space<vmem>>, vector<1x16xf32>,
    %c0_48 = arith.constant 0 : index
    %c0_49 = arith.constant 0 : index
    %80 = vector.load %arg29[%c0_48, %c0_49] : memref<4x16xf32, #tpu.memory_space<vmem>>, vector<4x16xf32>
    %c0_50 = arith.constant 0 : index
    %c0_51 = arith.constant 0 : index
    %81 = vector.load %arg16[%c0_50, %c0_51] : memref<16x16xf32, #tpu.memory_space<vmem>>, vector<16x16xf32>
    %cst_52 = arith.constant dense<0.000000e+00> : vector<4x16xf32>
    %82 = tpu.matmul %80, %81, %cst_52 {dimension_numbers = #tpu.dot_dimension_numbers<[1], [0], [0], [1], [0, 0, 1, 1], [], []>} : vector<4x16xf32>, vector<16x16xf32>, vector<4x16xf32> -> vector<4x16xf32>
    %c0_53 = arith.constant 0 : index
    %c0_54 = arith.constant 0 : index
    %83 = vector.load %arg17[%c0_53, %c0_54] : memref<1x16xf32, #tpu.memory_space<vmem>>, vector<1x16xf32>
    %84 = vector.broadcast %83 : vector<1x16xf32> to vector<4x16xf32>
    %85 = arith.addf %82, %84 : vector<4x16xf32>
    %c0_55 = arith.constant 0 : index
    %c0_56 = arith.constant 0 : index
    %86 = vector.load %arg3[%c0_55, %c0_56] : memref<48x32xf32, #tpu.memory_space<vmem>>, vector<48x32xf32>
    %c0_57 = arith.constant 0 : index
    %c0_58 = arith.constant 0 : index
    %87 = vector.load %arg4[%c0_57, %c0_58] : memref<192x8xf32, #tpu.memory_space<vmem>>, vector<192x8xf32>
    %c0_59 = arith.constant 0 : index
    %c0_60 = arith.constant 0 : index
    %88 = vector.load %arg18[%c0_59, %c0_60] : memref<32x32xf32, #tpu.memory_space<vmem>>, vector<32x32xf32>
    %cst_61 = arith.constant dense<0.000000e+00> : vector<48x32xf32>
    %89 = tpu.matmul %86, %88, %cst_61 {dimension_numbers = #tpu.dot_dimension_numbers<[1], [0], [0], [1], [0, 0, 1, 1], [], []>} : vector<48x32xf32>, vector<32x32xf32>, vector<48x32xf32> -> vector<48x32xf32>
    %90 = vector.extract_strided_slice %86 {offsets = [0, 0], sizes = [8, 32], strides = [1, 1]} : vector<48x32xf32> to vector<8x32xf32>
    %cst_62 = arith.constant dense<0.000000e+00> : vector<32xf32>
    %91 = vector.multi_reduction <add>, %90, %cst_62 [0] : vector<8x32xf32> to vector<32xf32>
    %92 = vector.shape_cast %91 : vector<32xf32> to vector<1x32xf32>
    %cst_63 = arith.constant 8.000000e+00 : f32
    %93 = vector.broadcast %cst_63 : f32 to vector<1x32xf32>
    %94 = arith.divf %92, %93 : vector<1x32xf32>
    %95 = vector.extract_strided_slice %89 {offsets = [0, 0], sizes = [8, 32], strides = [1, 1]} : vector<48x32xf32> to vector<8x32xf32>
    %cst_64 = arith.constant dense<0.000000e+00> : vector<1x8xf32>
    %96 = tpu.matmul %94, %95, %cst_64 {dimension_numbers = #tpu.dot_dimension_numbers<[1], [1], [0], [0], [0, 0, 1, 0], [], []>} : vector<1x32xf32>, vector<8x32xf32>, vector<1x8xf32> -> vector<1x8xf32>
    %cst_65 = arith.constant dense<0xFF800000> : vector<1xf32>
    %97 = vector.multi_reduction <maximumf>, %96, %cst_65 [1] : vector<1x8xf32> to vector<1xf32>
    %98 = vector.shape_cast %97 : vector<1xf32> to vector<1x1xf32>
    %99 = vector.broadcast %98 : vector<1x1xf32> to vector<1x8xf32>
    %100 = arith.subf %96, %99 : vector<1x8xf32>
    %101 = math.exp %100 : vector<1x8xf32>
    %cst_66 = arith.constant dense<0.000000e+00> : vector<1xf32>
    %102 = vector.multi_reduction <add>, %101, %cst_66 [1] : vector<1x8xf32> to vector<1xf32>
    %103 = vector.shape_cast %102 : vector<1xf32> to vector<1x1xf32>
    %104 = vector.broadcast %103 : vector<1x1xf32> to vector<1x8xf32>
    %105 = arith.divf %101, %104 : vector<1x8xf32>
    %106 = vector.extract_strided_slice %87 {offsets = [0, 0], sizes = [32, 8], strides = [1, 1]} : vector<192x8xf32> to vector<32x8xf32>
    %cst_67 = arith.constant dense<0.000000e+00> : vector<1x32xf32>
    %107 = tpu.matmul %105, %106, %cst_67 {dimension_numbers = #tpu.dot_dimension_numbers<[1], [1], [0], [0], [0, 0, 1, 0], [], []>} : vector<1x8xf32>, vector<32x8xf32>, vector<1x32xf32> -> vector<1x32xf32>
    %c0_68 = arith.constant 0 : index
    %c0_69 = arith.constant 0 : index
    %108 = vector.load %arg27[%c0_68, %c0_69] : memref<6x32xf32, #tpu.memory_space<vmem>>, vector<1x32xf32>
    tpu.vector_store %arg27[%c0_68, %c0_69], %107 {strides = array<i32>} : memref<6x32xf32, #tpu.memory_space<vmem>>, vector<1x32xf32>,
    %109 = vector.extract_strided_slice %86 {offsets = [8, 0], sizes = [8, 32], strides = [1, 1]} : vector<48x32xf32> to vector<8x32xf32>
    %cst_70 = arith.constant dense<0.000000e+00> : vector<32xf32>
    %110 = vector.multi_reduction <add>, %109, %cst_70 [0] : vector<8x32xf32> to vector<32xf32>
    %111 = vector.shape_cast %110 : vector<32xf32> to vector<1x32xf32>
    %cst_71 = arith.constant 8.000000e+00 : f32
    %112 = vector.broadcast %cst_71 : f32 to vector<1x32xf32>
    %113 = arith.divf %111, %112 : vector<1x32xf32>
    %114 = vector.extract_strided_slice %89 {offsets = [8, 0], sizes = [8, 32], strides = [1, 1]} : vector<48x32xf32> to vector<8x32xf32>
    %cst_72 = arith.constant dense<0.000000e+00> : vector<1x8xf32>
    %115 = tpu.matmul %113, %114, %cst_72 {dimension_numbers = #tpu.dot_dimension_numbers<[1], [1], [0], [0], [0, 0, 1, 0], [], []>} : vector<1x32xf32>, vector<8x32xf32>, vector<1x8xf32> -> vector<1x8xf32>
    %cst_73 = arith.constant dense<0xFF800000> : vector<1xf32>
    %116 = vector.multi_reduction <maximumf>, %115, %cst_73 [1] : vector<1x8xf32> to vector<1xf32>
    %117 = vector.shape_cast %116 : vector<1xf32> to vector<1x1xf32>
    %118 = vector.broadcast %117 : vector<1x1xf32> to vector<1x8xf32>
    %119 = arith.subf %115, %118 : vector<1x8xf32>
    %120 = math.exp %119 : vector<1x8xf32>
    %cst_74 = arith.constant dense<0.000000e+00> : vector<1xf32>
    %121 = vector.multi_reduction <add>, %120, %cst_74 [1] : vector<1x8xf32> to vector<1xf32>
    %122 = vector.shape_cast %121 : vector<1xf32> to vector<1x1xf32>
    %123 = vector.broadcast %122 : vector<1x1xf32> to vector<1x8xf32>
    %124 = arith.divf %120, %123 : vector<1x8xf32>
    %125 = vector.extract_strided_slice %87 {offsets = [32, 0], sizes = [32, 8], strides = [1, 1]} : vector<192x8xf32> to vector<32x8xf32>
    %cst_75 = arith.constant dense<0.000000e+00> : vector<1x32xf32>
    %126 = tpu.matmul %124, %125, %cst_75 {dimension_numbers = #tpu.dot_dimension_numbers<[1], [1], [0], [0], [0, 0, 1, 0], [], []>} : vector<1x8xf32>, vector<32x8xf32>, vector<1x32xf32> -> vector<1x32xf32>
    %c1_76 = arith.constant 1 : index
    %c0_77 = arith.constant 0 : index
    %127 = vector.load %arg27[%c1_76, %c0_77] : memref<6x32xf32, #tpu.memory_space<vmem>>, vector<1x32xf32>
    tpu.vector_store %arg27[%c1_76, %c0_77], %126 {strides = array<i32>} : memref<6x32xf32, #tpu.memory_space<vmem>>, vector<1x32xf32>,
    %128 = vector.extract_strided_slice %86 {offsets = [16, 0], sizes = [8, 32], strides = [1, 1]} : vector<48x32xf32> to vector<8x32xf32>
    %cst_78 = arith.constant dense<0.000000e+00> : vector<32xf32>
    %129 = vector.multi_reduction <add>, %128, %cst_78 [0] : vector<8x32xf32> to vector<32xf32>
    %130 = vector.shape_cast %129 : vector<32xf32> to vector<1x32xf32>
    %cst_79 = arith.constant 8.000000e+00 : f32
    %131 = vector.broadcast %cst_79 : f32 to vector<1x32xf32>
    %132 = arith.divf %130, %131 : vector<1x32xf32>
    %133 = vector.extract_strided_slice %89 {offsets = [16, 0], sizes = [8, 32], strides = [1, 1]} : vector<48x32xf32> to vector<8x32xf32>
    %cst_80 = arith.constant dense<0.000000e+00> : vector<1x8xf32>
    %134 = tpu.matmul %132, %133, %cst_80 {dimension_numbers = #tpu.dot_dimension_numbers<[1], [1], [0], [0], [0, 0, 1, 0], [], []>} : vector<1x32xf32>, vector<8x32xf32>, vector<1x8xf32> -> vector<1x8xf32>
    %cst_81 = arith.constant dense<0xFF800000> : vector<1xf32>
    %135 = vector.multi_reduction <maximumf>, %134, %cst_81 [1] : vector<1x8xf32> to vector<1xf32>
    %136 = vector.shape_cast %135 : vector<1xf32> to vector<1x1xf32>
    %137 = vector.broadcast %136 : vector<1x1xf32> to vector<1x8xf32>
    %138 = arith.subf %134, %137 : vector<1x8xf32>
    %139 = math.exp %138 : vector<1x8xf32>
    %cst_82 = arith.constant dense<0.000000e+00> : vector<1xf32>
    %140 = vector.multi_reduction <add>, %139, %cst_82 [1] : vector<1x8xf32> to vector<1xf32>
    %141 = vector.shape_cast %140 : vector<1xf32> to vector<1x1xf32>
    %142 = vector.broadcast %141 : vector<1x1xf32> to vector<1x8xf32>
    %143 = arith.divf %139, %142 : vector<1x8xf32>
    %144 = vector.extract_strided_slice %87 {offsets = [64, 0], sizes = [32, 8], strides = [1, 1]} : vector<192x8xf32> to vector<32x8xf32>
    %cst_83 = arith.constant dense<0.000000e+00> : vector<1x32xf32>
    %145 = tpu.matmul %143, %144, %cst_83 {dimension_numbers = #tpu.dot_dimension_numbers<[1], [1], [0], [0], [0, 0, 1, 0], [], []>} : vector<1x8xf32>, vector<32x8xf32>, vector<1x32xf32> -> vector<1x32xf32>
    %c2_84 = arith.constant 2 : index
    %c0_85 = arith.constant 0 : index
    %146 = vector.load %arg27[%c2_84, %c0_85] : memref<6x32xf32, #tpu.memory_space<vmem>>, vector<1x32xf32>
    tpu.vector_store %arg27[%c2_84, %c0_85], %145 {strides = array<i32>} : memref<6x32xf32, #tpu.memory_space<vmem>>, vector<1x32xf32>,
    %147 = vector.extract_strided_slice %86 {offsets = [24, 0], sizes = [8, 32], strides = [1, 1]} : vector<48x32xf32> to vector<8x32xf32>
    %cst_86 = arith.constant dense<0.000000e+00> : vector<32xf32>
    %148 = vector.multi_reduction <add>, %147, %cst_86 [0] : vector<8x32xf32> to vector<32xf32>
    %149 = vector.shape_cast %148 : vector<32xf32> to vector<1x32xf32>
    %cst_87 = arith.constant 8.000000e+00 : f32
    %150 = vector.broadcast %cst_87 : f32 to vector<1x32xf32>
    %151 = arith.divf %149, %150 : vector<1x32xf32>
    %152 = vector.extract_strided_slice %89 {offsets = [24, 0], sizes = [8, 32], strides = [1, 1]} : vector<48x32xf32> to vector<8x32xf32>
    %cst_88 = arith.constant dense<0.000000e+00> : vector<1x8xf32>
    %153 = tpu.matmul %151, %152, %cst_88 {dimension_numbers = #tpu.dot_dimension_numbers<[1], [1], [0], [0], [0, 0, 1, 0], [], []>} : vector<1x32xf32>, vector<8x32xf32>, vector<1x8xf32> -> vector<1x8xf32>
    %cst_89 = arith.constant dense<0xFF800000> : vector<1xf32>
    %154 = vector.multi_reduction <maximumf>, %153, %cst_89 [1] : vector<1x8xf32> to vector<1xf32>
    %155 = vector.shape_cast %154 : vector<1xf32> to vector<1x1xf32>
    %156 = vector.broadcast %155 : vector<1x1xf32> to vector<1x8xf32>
    %157 = arith.subf %153, %156 : vector<1x8xf32>
    %158 = math.exp %157 : vector<1x8xf32>
    %cst_90 = arith.constant dense<0.000000e+00> : vector<1xf32>
    %159 = vector.multi_reduction <add>, %158, %cst_90 [1] : vector<1x8xf32> to vector<1xf32>
    %160 = vector.shape_cast %159 : vector<1xf32> to vector<1x1xf32>
    %161 = vector.broadcast %160 : vector<1x1xf32> to vector<1x8xf32>
    %162 = arith.divf %158, %161 : vector<1x8xf32>
    %163 = vector.extract_strided_slice %87 {offsets = [96, 0], sizes = [32, 8], strides = [1, 1]} : vector<192x8xf32> to vector<32x8xf32>
    %cst_91 = arith.constant dense<0.000000e+00> : vector<1x32xf32>
    %164 = tpu.matmul %162, %163, %cst_91 {dimension_numbers = #tpu.dot_dimension_numbers<[1], [1], [0], [0], [0, 0, 1, 0], [], []>} : vector<1x8xf32>, vector<32x8xf32>, vector<1x32xf32> -> vector<1x32xf32>
    %c3_92 = arith.constant 3 : index
    %c0_93 = arith.constant 0 : index
    %165 = vector.load %arg27[%c3_92, %c0_93] : memref<6x32xf32, #tpu.memory_space<vmem>>, vector<1x32xf32>
    tpu.vector_store %arg27[%c3_92, %c0_93], %164 {strides = array<i32>} : memref<6x32xf32, #tpu.memory_space<vmem>>, vector<1x32xf32>,
    %166 = vector.extract_strided_slice %86 {offsets = [32, 0], sizes = [8, 32], strides = [1, 1]} : vector<48x32xf32> to vector<8x32xf32>
    %cst_94 = arith.constant dense<0.000000e+00> : vector<32xf32>
    %167 = vector.multi_reduction <add>, %166, %cst_94 [0] : vector<8x32xf32> to vector<32xf32>
    %168 = vector.shape_cast %167 : vector<32xf32> to vector<1x32xf32>
    %cst_95 = arith.constant 8.000000e+00 : f32
    %169 = vector.broadcast %cst_95 : f32 to vector<1x32xf32>
    %170 = arith.divf %168, %169 : vector<1x32xf32>
    %171 = vector.extract_strided_slice %89 {offsets = [32, 0], sizes = [8, 32], strides = [1, 1]} : vector<48x32xf32> to vector<8x32xf32>
    %cst_96 = arith.constant dense<0.000000e+00> : vector<1x8xf32>
    %172 = tpu.matmul %170, %171, %cst_96 {dimension_numbers = #tpu.dot_dimension_numbers<[1], [1], [0], [0], [0, 0, 1, 0], [], []>} : vector<1x32xf32>, vector<8x32xf32>, vector<1x8xf32> -> vector<1x8xf32>
    %cst_97 = arith.constant dense<0xFF800000> : vector<1xf32>
    %173 = vector.multi_reduction <maximumf>, %172, %cst_97 [1] : vector<1x8xf32> to vector<1xf32>
    %174 = vector.shape_cast %173 : vector<1xf32> to vector<1x1xf32>
    %175 = vector.broadcast %174 : vector<1x1xf32> to vector<1x8xf32>
    %176 = arith.subf %172, %175 : vector<1x8xf32>
    %177 = math.exp %176 : vector<1x8xf32>
    %cst_98 = arith.constant dense<0.000000e+00> : vector<1xf32>
    %178 = vector.multi_reduction <add>, %177, %cst_98 [1] : vector<1x8xf32> to vector<1xf32>
    %179 = vector.shape_cast %178 : vector<1xf32> to vector<1x1xf32>
    %180 = vector.broadcast %179 : vector<1x1xf32> to vector<1x8xf32>
    %181 = arith.divf %177, %180 : vector<1x8xf32>
    %182 = vector.extract_strided_slice %87 {offsets = [128, 0], sizes = [32, 8], strides = [1, 1]} : vector<192x8xf32> to vector<32x8xf32>
    %cst_99 = arith.constant dense<0.000000e+00> : vector<1x32xf32>
    %183 = tpu.matmul %181, %182, %cst_99 {dimension_numbers = #tpu.dot_dimension_numbers<[1], [1], [0], [0], [0, 0, 1, 0], [], []>} : vector<1x8xf32>, vector<32x8xf32>, vector<1x32xf32> -> vector<1x32xf32>
    %c4 = arith.constant 4 : index
    %c0_100 = arith.constant 0 : index
    %184 = vector.load %arg27[%c4, %c0_100] : memref<6x32xf32, #tpu.memory_space<vmem>>, vector<1x32xf32>
    tpu.vector_store %arg27[%c4, %c0_100], %183 {strides = array<i32>} : memref<6x32xf32, #tpu.memory_space<vmem>>, vector<1x32xf32>,
    %185 = vector.extract_strided_slice %86 {offsets = [40, 0], sizes = [8, 32], strides = [1, 1]} : vector<48x32xf32> to vector<8x32xf32>
    %cst_101 = arith.constant dense<0.000000e+00> : vector<32xf32>
    %186 = vector.multi_reduction <add>, %185, %cst_101 [0] : vector<8x32xf32> to vector<32xf32>
    %187 = vector.shape_cast %186 : vector<32xf32> to vector<1x32xf32>
    %cst_102 = arith.constant 8.000000e+00 : f32
    %188 = vector.broadcast %cst_102 : f32 to vector<1x32xf32>
    %189 = arith.divf %187, %188 : vector<1x32xf32>
    %190 = vector.extract_strided_slice %89 {offsets = [40, 0], sizes = [8, 32], strides = [1, 1]} : vector<48x32xf32> to vector<8x32xf32>
    %cst_103 = arith.constant dense<0.000000e+00> : vector<1x8xf32>
    %191 = tpu.matmul %189, %190, %cst_103 {dimension_numbers = #tpu.dot_dimension_numbers<[1], [1], [0], [0], [0, 0, 1, 0], [], []>} : vector<1x32xf32>, vector<8x32xf32>, vector<1x8xf32> -> vector<1x8xf32>
    %cst_104 = arith.constant dense<0xFF800000> : vector<1xf32>
    %192 = vector.multi_reduction <maximumf>, %191, %cst_104 [1] : vector<1x8xf32> to vector<1xf32>
    %193 = vector.shape_cast %192 : vector<1xf32> to vector<1x1xf32>
    %194 = vector.broadcast %193 : vector<1x1xf32> to vector<1x8xf32>
    %195 = arith.subf %191, %194 : vector<1x8xf32>
    %196 = math.exp %195 : vector<1x8xf32>
    %cst_105 = arith.constant dense<0.000000e+00> : vector<1xf32>
    %197 = vector.multi_reduction <add>, %196, %cst_105 [1] : vector<1x8xf32> to vector<1xf32>
    %198 = vector.shape_cast %197 : vector<1xf32> to vector<1x1xf32>
    %199 = vector.broadcast %198 : vector<1x1xf32> to vector<1x8xf32>
    %200 = arith.divf %196, %199 : vector<1x8xf32>
    %201 = vector.extract_strided_slice %87 {offsets = [160, 0], sizes = [32, 8], strides = [1, 1]} : vector<192x8xf32> to vector<32x8xf32>
    %cst_106 = arith.constant dense<0.000000e+00> : vector<1x32xf32>
    %202 = tpu.matmul %200, %201, %cst_106 {dimension_numbers = #tpu.dot_dimension_numbers<[1], [1], [0], [0], [0, 0, 1, 0], [], []>} : vector<1x8xf32>, vector<32x8xf32>, vector<1x32xf32> -> vector<1x32xf32>
    %c5 = arith.constant 5 : index
    %c0_107 = arith.constant 0 : index
    %203 = vector.load %arg27[%c5, %c0_107] : memref<6x32xf32, #tpu.memory_space<vmem>>, vector<1x32xf32>
    tpu.vector_store %arg27[%c5, %c0_107], %202 {strides = array<i32>} : memref<6x32xf32, #tpu.memory_space<vmem>>, vector<1x32xf32>,
    %c0_108 = arith.constant 0 : index
    %c0_109 = arith.constant 0 : index
    %204 = vector.load %arg27[%c0_108, %c0_109] : memref<6x32xf32, #tpu.memory_space<vmem>>, vector<6x32xf32>
    %c0_110 = arith.constant 0 : index
    %c0_111 = arith.constant 0 : index
    %205 = vector.load %arg19[%c0_110, %c0_111] : memref<32x8xf32, #tpu.memory_space<vmem>>, vector<32x8xf32>
    %cst_112 = arith.constant dense<0.000000e+00> : vector<6x8xf32>
    %206 = tpu.matmul %204, %205, %cst_112 {dimension_numbers = #tpu.dot_dimension_numbers<[1], [0], [0], [1], [0, 0, 1, 1], [], []>} : vector<6x32xf32>, vector<32x8xf32>, vector<6x8xf32> -> vector<6x8xf32>
    %c0_113 = arith.constant 0 : index
    %c0_114 = arith.constant 0 : index
    %207 = vector.load %arg20[%c0_113, %c0_114] : memref<1x8xf32, #tpu.memory_space<vmem>>, vector<1x8xf32>
    %208 = vector.broadcast %207 : vector<1x8xf32> to vector<6x8xf32>
    %209 = arith.addf %206, %208 : vector<6x8xf32>
    %c0_115 = arith.constant 0 : index
    %c0_116 = arith.constant 0 : index
    %210 = vector.load %arg21[%c0_115, %c0_116] : memref<8x32xf32, #tpu.memory_space<vmem>>, vector<8x32xf32>
    %cst_117 = arith.constant dense<0.000000e+00> : vector<6x32xf32>
    %211 = tpu.matmul %209, %210, %cst_117 {dimension_numbers = #tpu.dot_dimension_numbers<[1], [0], [0], [1], [0, 0, 1, 1], [], []>} : vector<6x8xf32>, vector<8x32xf32>, vector<6x32xf32> -> vector<6x32xf32>
    %c0_118 = arith.constant 0 : index
    %c0_119 = arith.constant 0 : index
    %212 = vector.load %arg28[%c0_118, %c0_119] : memref<6x32xf32, #tpu.memory_space<vmem>>, vector<6x32xf32>
    tpu.vector_store %arg28[%c0_118, %c0_119], %211 {strides = array<i32>} : memref<6x32xf32, #tpu.memory_space<vmem>>, vector<6x32xf32>,
    %c0_120 = arith.constant 0 : index
    %c0_121 = arith.constant 0 : index
    %213 = vector.load %arg5[%c0_120, %c0_121] : memref<4x6xf32, #tpu.memory_space<vmem>>, vector<4x6xf32>
    %cst_122 = arith.constant dense<0.000000e+00> : vector<4x8xf32>
    %214 = tpu.matmul %213, %209, %cst_122 {dimension_numbers = #tpu.dot_dimension_numbers<[1], [0], [0], [1], [0, 0, 1, 1], [], []>} : vector<4x6xf32>, vector<6x8xf32>, vector<4x8xf32> -> vector<4x8xf32>
    %c0_123 = arith.constant 0 : index
    %c0_124 = arith.constant 0 : index
    %215 = vector.load %arg6[%c0_123, %c0_124] : memref<4x6xf32, #tpu.memory_space<vmem>>, vector<4x6xf32>
    %cst_125 = arith.constant dense<0.000000e+00> : vector<4x8xf32>
    %216 = tpu.matmul %215, %209, %cst_125 {dimension_numbers = #tpu.dot_dimension_numbers<[1], [0], [0], [1], [0, 0, 1, 1], [], []>} : vector<4x6xf32>, vector<6x8xf32>, vector<4x8xf32> -> vector<4x8xf32>
    %c0_126 = arith.constant 0 : index
    %c0_127 = arith.constant 0 : index
    %217 = vector.load %arg23[%c0_126, %c0_127] : memref<1x1xf32, #tpu.memory_space<vmem>>, vector<1x1xf32>
    %cst_128 = arith.constant 0.000000e+00 : f32
    %218 = vector.broadcast %cst_128 : f32 to vector<4x10xf32>
    %cst_129 = arith.constant 0.000000e+00 : f32
    %219 = vector.broadcast %cst_129 : f32 to vector<4x10xf32>
    %c0_130 = arith.constant 0 : index
    %c0_131 = arith.constant 0 : index
    %220 = vector.load %arg22[%c0_130, %c0_131] : memref<48x1xf32, #tpu.memory_space<vmem>>, vector<16x1xf32>
    %c0_132 = arith.constant 0 : index
    %c0_133 = arith.constant 0 : index
    %221 = vector.load %arg24[%c0_132, %c0_133] : memref<48x10xf32, #tpu.memory_space<vmem>>, vector<16x10xf32>
    %cst_134 = arith.constant dense<0.000000e+00> : vector<4x1xf32>
    %222 = tpu.matmul %42, %220, %cst_134 {dimension_numbers = #tpu.dot_dimension_numbers<[1], [0], [0], [1], [0, 0, 1, 1], [], []>} : vector<4x16xf32>, vector<16x1xf32>, vector<4x1xf32> -> vector<4x1xf32>
    %223 = vector.broadcast %217 : vector<1x1xf32> to vector<4x1xf32>
    %224 = arith.addf %223, %222 : vector<4x1xf32>
    %cst_135 = arith.constant dense<0.000000e+00> : vector<4x10xf32>
    %225 = tpu.matmul %42, %221, %cst_135 {dimension_numbers = #tpu.dot_dimension_numbers<[1], [0], [0], [1], [0, 0, 1, 1], [], []>} : vector<4x16xf32>, vector<16x10xf32>, vector<4x10xf32> -> vector<4x10xf32>
    %226 = arith.addf %218, %225 : vector<4x10xf32>
    %227 = arith.mulf %42, %42 : vector<4x16xf32>
    %228 = arith.mulf %221, %221 : vector<16x10xf32>
    %cst_136 = arith.constant dense<0.000000e+00> : vector<4x10xf32>
    %229 = tpu.matmul %227, %228, %cst_136 {dimension_numbers = #tpu.dot_dimension_numbers<[1], [0], [0], [1], [0, 0, 1, 1], [], []>} : vector<4x16xf32>, vector<16x10xf32>, vector<4x10xf32> -> vector<4x10xf32>
    %230 = arith.addf %219, %229 : vector<4x10xf32>
    %c16 = arith.constant 16 : index
    %c0_137 = arith.constant 0 : index
    %231 = vector.load %arg22[%c16, %c0_137] : memref<48x1xf32, #tpu.memory_space<vmem>>, vector<16x1xf32>
    %c16_138 = arith.constant 16 : index
    %c0_139 = arith.constant 0 : index
    %232 = vector.load %arg24[%c16_138, %c0_139] : memref<48x10xf32, #tpu.memory_space<vmem>>, vector<16x10xf32>
    %cst_140 = arith.constant dense<0.000000e+00> : vector<4x1xf32>
    %233 = tpu.matmul %85, %231, %cst_140 {dimension_numbers = #tpu.dot_dimension_numbers<[1], [0], [0], [1], [0, 0, 1, 1], [], []>} : vector<4x16xf32>, vector<16x1xf32>, vector<4x1xf32> -> vector<4x1xf32>
    %234 = arith.addf %224, %233 : vector<4x1xf32>
    %cst_141 = arith.constant dense<0.000000e+00> : vector<4x10xf32>
    %235 = tpu.matmul %85, %232, %cst_141 {dimension_numbers = #tpu.dot_dimension_numbers<[1], [0], [0], [1], [0, 0, 1, 1], [], []>} : vector<4x16xf32>, vector<16x10xf32>, vector<4x10xf32> -> vector<4x10xf32>
    %236 = arith.addf %226, %235 : vector<4x10xf32>
    %237 = arith.mulf %85, %85 : vector<4x16xf32>
    %238 = arith.mulf %232, %232 : vector<16x10xf32>
    %cst_142 = arith.constant dense<0.000000e+00> : vector<4x10xf32>
    %239 = tpu.matmul %237, %238, %cst_142 {dimension_numbers = #tpu.dot_dimension_numbers<[1], [0], [0], [1], [0, 0, 1, 1], [], []>} : vector<4x16xf32>, vector<16x10xf32>, vector<4x10xf32> -> vector<4x10xf32>
    %240 = arith.addf %230, %239 : vector<4x10xf32>
    %c32 = arith.constant 32 : index
    %c0_143 = arith.constant 0 : index
    %241 = vector.load %arg22[%c32, %c0_143] : memref<48x1xf32, #tpu.memory_space<vmem>>, vector<8x1xf32>
    %c32_144 = arith.constant 32 : index
    %c0_145 = arith.constant 0 : index
    %242 = vector.load %arg24[%c32_144, %c0_145] : memref<48x10xf32, #tpu.memory_space<vmem>>, vector<8x10xf32>
    %cst_146 = arith.constant dense<0.000000e+00> : vector<4x1xf32>
    %243 = tpu.matmul %214, %241, %cst_146 {dimension_numbers = #tpu.dot_dimension_numbers<[1], [0], [0], [1], [0, 0, 1, 1], [], []>} : vector<4x8xf32>, vector<8x1xf32>, vector<4x1xf32> -> vector<4x1xf32>
    %244 = arith.addf %234, %243 : vector<4x1xf32>
    %cst_147 = arith.constant dense<0.000000e+00> : vector<4x10xf32>
    %245 = tpu.matmul %214, %242, %cst_147 {dimension_numbers = #tpu.dot_dimension_numbers<[1], [0], [0], [1], [0, 0, 1, 1], [], []>} : vector<4x8xf32>, vector<8x10xf32>, vector<4x10xf32> -> vector<4x10xf32>
    %246 = arith.addf %236, %245 : vector<4x10xf32>
    %247 = arith.mulf %214, %214 : vector<4x8xf32>
    %248 = arith.mulf %242, %242 : vector<8x10xf32>
    %cst_148 = arith.constant dense<0.000000e+00> : vector<4x10xf32>
    %249 = tpu.matmul %247, %248, %cst_148 {dimension_numbers = #tpu.dot_dimension_numbers<[1], [0], [0], [1], [0, 0, 1, 1], [], []>} : vector<4x8xf32>, vector<8x10xf32>, vector<4x10xf32> -> vector<4x10xf32>
    %250 = arith.addf %240, %249 : vector<4x10xf32>
    %c40 = arith.constant 40 : index
    %c0_149 = arith.constant 0 : index
    %251 = vector.load %arg22[%c40, %c0_149] : memref<48x1xf32, #tpu.memory_space<vmem>>, vector<8x1xf32>
    %c40_150 = arith.constant 40 : index
    %c0_151 = arith.constant 0 : index
    %252 = vector.load %arg24[%c40_150, %c0_151] : memref<48x10xf32, #tpu.memory_space<vmem>>, vector<8x10xf32>
    %cst_152 = arith.constant dense<0.000000e+00> : vector<4x1xf32>
    %253 = tpu.matmul %216, %251, %cst_152 {dimension_numbers = #tpu.dot_dimension_numbers<[1], [0], [0], [1], [0, 0, 1, 1], [], []>} : vector<4x8xf32>, vector<8x1xf32>, vector<4x1xf32> -> vector<4x1xf32>
    %254 = arith.addf %244, %253 : vector<4x1xf32>
    %cst_153 = arith.constant dense<0.000000e+00> : vector<4x10xf32>
    %255 = tpu.matmul %216, %252, %cst_153 {dimension_numbers = #tpu.dot_dimension_numbers<[1], [0], [0], [1], [0, 0, 1, 1], [], []>} : vector<4x8xf32>, vector<8x10xf32>, vector<4x10xf32> -> vector<4x10xf32>
    %256 = arith.addf %246, %255 : vector<4x10xf32>
    %257 = arith.mulf %216, %216 : vector<4x8xf32>
    %258 = arith.mulf %252, %252 : vector<8x10xf32>
    %cst_154 = arith.constant dense<0.000000e+00> : vector<4x10xf32>
    %259 = tpu.matmul %257, %258, %cst_154 {dimension_numbers = #tpu.dot_dimension_numbers<[1], [0], [0], [1], [0, 0, 1, 1], [], []>} : vector<4x8xf32>, vector<8x10xf32>, vector<4x10xf32> -> vector<4x10xf32>
    %260 = arith.addf %250, %259 : vector<4x10xf32>
    %261 = arith.mulf %256, %256 : vector<4x10xf32>
    %262 = arith.subf %261, %260 : vector<4x10xf32>
    %cst_155 = arith.constant dense<0.000000e+00> : vector<4xf32>
    %263 = vector.multi_reduction <add>, %262, %cst_155 [1] : vector<4x10xf32> to vector<4xf32>
    %264 = vector.shape_cast %263 : vector<4xf32> to vector<4x1xf32>
    %cst_156 = arith.constant 5.000000e-01 : f32
    %265 = vector.broadcast %cst_156 : f32 to vector<4x1xf32>
    %266 = arith.mulf %265, %264 : vector<4x1xf32>
    %267 = arith.addf %266, %254 : vector<4x1xf32>
    %c0_157 = arith.constant 0 : index
    %c0_158 = arith.constant 0 : index
    %268 = vector.load %arg7[%c0_157, %c0_158] : memref<4x1xf32, #tpu.memory_space<vmem>>, vector<4x1xf32>
    %269 = arith.addf %267, %268 : vector<4x1xf32>
    %c0_159 = arith.constant 0 : index
    %c0_160 = arith.constant 0 : index
    %270 = vector.load %arg8[%c0_159, %c0_160] : memref<4x1xf32, #tpu.memory_space<vmem>>, vector<4x1xf32>
    %271 = arith.addf %269, %270 : vector<4x1xf32>
    %c0_161 = arith.constant 0 : index
    %c0_162 = arith.constant 0 : index
    %272 = vector.load %arg25[%c0_161, %c0_162] : memref<4x1xf32, #tpu.memory_space<vmem>>, vector<4x1xf32>
    tpu.vector_store %arg25[%c0_161, %c0_162], %271 {strides = array<i32>} : memref<4x1xf32, #tpu.memory_space<vmem>>, vector<4x1xf32>,
    %c0_163 = arith.constant 0 : index
    %c0_164 = arith.constant 0 : index
    %273 = vector.load %arg9[%c0_163, %c0_164] : memref<4x1xf32, #tpu.memory_space<vmem>>, vector<4x1xf32>
    %274 = arith.subf %271, %273 : vector<4x1xf32>
    %275 = arith.mulf %274, %274 : vector<4x1xf32>
    %c0_165 = arith.constant 0 : index
    %c0_166 = arith.constant 0 : index
    %276 = vector.load %arg26[%c0_165, %c0_166] : memref<4x1xf32, #tpu.memory_space<vmem>>, vector<4x1xf32>
    tpu.vector_store %arg26[%c0_165, %c0_166], %275 {strides = array<i32>} : memref<4x1xf32, #tpu.memory_space<vmem>>, vector<4x1xf32>,
    return
  }
  func.func @transform_0(%arg0: i32) -> (i32, i32) {
    %c0_i32 = arith.constant 0 : i32
    %c0_i32_0 = arith.constant 0 : i32
    %c0_i32_1 = arith.constant 0 : i32
    return %c0_i32, %c0_i32_0 : i32, i32
  }
  func.func @transform_1(%arg0: i32) -> (i32, i32) {
    %c0_i32 = arith.constant 0 : i32
    %c0_i32_0 = arith.constant 0 : i32
    %c0_i32_1 = arith.constant 0 : i32
    return %c0_i32, %c0_i32_0 : i32, i32
  }
  func.func @transform_2(%arg0: i32) -> (i32, i32) {
    %c0_i32 = arith.constant 0 : i32
    %c0_i32_0 = arith.constant 0 : i32
    %c0_i32_1 = arith.constant 0 : i32
    return %c0_i32, %c0_i32_0 : i32, i32
  }
  func.func @transform_3(%arg0: i32) -> (i32, i32) {
    %c0_i32 = arith.constant 0 : i32
    %c0_i32_0 = arith.constant 0 : i32
    %c0_i32_1 = arith.constant 0 : i32
    return %c0_i32, %c0_i32_0 : i32, i32
  }
  func.func @transform_4(%arg0: i32) -> (i32, i32) {
    %c0_i32 = arith.constant 0 : i32
    %c0_i32_0 = arith.constant 0 : i32
    %c0_i32_1 = arith.constant 0 : i32
    return %c0_i32, %c0_i32_0 : i32, i32
  }
  func.func @transform_5(%arg0: i32) -> (i32, i32) {
    %c0_i32 = arith.constant 0 : i32
    %c0_i32_0 = arith.constant 0 : i32
    %c0_i32_1 = arith.constant 0 : i32
    return %c0_i32, %c0_i32_0 : i32, i32
  }
  func.func @transform_6(%arg0: i32) -> (i32, i32) {
    %c0_i32 = arith.constant 0 : i32
    %c0_i32_0 = arith.constant 0 : i32
    %c0_i32_1 = arith.constant 0 : i32
    return %c0_i32, %c0_i32_0 : i32, i32
  }
  func.func @transform_7(%arg0: i32) -> (i32, i32) {
    %c0_i32 = arith.constant 0 : i32
    %c0_i32_0 = arith.constant 0 : i32
    %c0_i32_1 = arith.constant 0 : i32
    return %c0_i32, %c0_i32_0 : i32, i32
  }
  func.func @transform_8(%arg0: i32) -> (i32, i32) {
    %c0_i32 = arith.constant 0 : i32
    %c0_i32_0 = arith.constant 0 : i32
    %c0_i32_1 = arith.constant 0 : i32
    return %c0_i32, %c0_i32_0 : i32, i32
  }
  func.func @transform_9(%arg0: i32) -> (i32, i32, i32) {
    %c0_i32 = arith.constant 0 : i32
    %c0_i32_0 = arith.constant 0 : i32
    %c0_i32_1 = arith.constant 0 : i32
    %c0_i32_2 = arith.constant 0 : i32
    return %c0_i32, %c0_i32_0, %c0_i32_1 : i32, i32, i32
  }
  func.func @transform_10(%arg0: i32) -> (i32, i32) {
    %c0_i32 = arith.constant 0 : i32
    %c0_i32_0 = arith.constant 0 : i32
    %c0_i32_1 = arith.constant 0 : i32
    return %c0_i32, %c0_i32_0 : i32, i32
  }
  func.func @transform_11(%arg0: i32) -> (i32, i32, i32) {
    %c0_i32 = arith.constant 0 : i32
    %c0_i32_0 = arith.constant 0 : i32
    %c0_i32_1 = arith.constant 0 : i32
    %c0_i32_2 = arith.constant 0 : i32
    return %c0_i32, %c0_i32_0, %c0_i32_1 : i32, i32, i32
  }
  func.func @transform_12(%arg0: i32) -> (i32, i32) {
    %c0_i32 = arith.constant 0 : i32
    %c0_i32_0 = arith.constant 0 : i32
    %c0_i32_1 = arith.constant 0 : i32
    return %c0_i32, %c0_i32_0 : i32, i32
  }
  func.func @transform_13(%arg0: i32) -> (i32, i32) {
    %c0_i32 = arith.constant 0 : i32
    %c0_i32_0 = arith.constant 0 : i32
    %c0_i32_1 = arith.constant 0 : i32
    return %c0_i32, %c0_i32_0 : i32, i32
  }
  func.func @transform_14(%arg0: i32) -> (i32, i32) {
    %c0_i32 = arith.constant 0 : i32
    %c0_i32_0 = arith.constant 0 : i32
    %c0_i32_1 = arith.constant 0 : i32
    return %c0_i32, %c0_i32_0 : i32, i32
  }
  func.func @transform_15(%arg0: i32) -> (i32, i32) {
    %c0_i32 = arith.constant 0 : i32
    %c0_i32_0 = arith.constant 0 : i32
    %c0_i32_1 = arith.constant 0 : i32
    return %c0_i32, %c0_i32_0 : i32, i32
  }
  func.func @transform_16(%arg0: i32) -> (i32, i32) {
    %c0_i32 = arith.constant 0 : i32
    %c0_i32_0 = arith.constant 0 : i32
    %c0_i32_1 = arith.constant 0 : i32
    return %c0_i32, %c0_i32_0 : i32, i32
  }
  func.func @transform_17(%arg0: i32) -> (i32, i32) {
    %c0_i32 = arith.constant 0 : i32
    %c0_i32_0 = arith.constant 0 : i32
    %c0_i32_1 = arith.constant 0 : i32
    return %c0_i32, %c0_i32_0 : i32, i32
  }
  func.func @transform_18(%arg0: i32) -> (i32, i32) {
    %c0_i32 = arith.constant 0 : i32
    %c0_i32_0 = arith.constant 0 : i32
    %c0_i32_1 = arith.constant 0 : i32
    return %c0_i32, %c0_i32_0 : i32, i32
  }
  func.func @transform_19(%arg0: i32) -> (i32, i32) {
    %c0_i32 = arith.constant 0 : i32
    %c0_i32_0 = arith.constant 0 : i32
    %c0_i32_1 = arith.constant 0 : i32
    return %c0_i32, %c0_i32_0 : i32, i32
  }
  func.func @transform_20(%arg0: i32) -> (i32, i32) {
    %c0_i32 = arith.constant 0 : i32
    %c0_i32_0 = arith.constant 0 : i32
    %c0_i32_1 = arith.constant 0 : i32
    return %c0_i32, %c0_i32_0 : i32, i32
  }
  func.func @transform_21(%arg0: i32) -> (i32, i32) {
    %c0_i32 = arith.constant 0 : i32
    %c0_i32_0 = arith.constant 0 : i32
    %c0_i32_1 = arith.constant 0 : i32
    return %c0_i32, %c0_i32_0 : i32, i32
  }
  func.func @transform_22(%arg0: i32) -> (i32, i32) {
    %c0_i32 = arith.constant 0 : i32
    %c0_i32_0 = arith.constant 0 : i32
    %c0_i32_1 = arith.constant 0 : i32
    return %c0_i32, %c0_i32_0 : i32, i32
  }
  func.func @transform_23(%arg0: i32) -> (i32, i32) {
    %c0_i32 = arith.constant 0 : i32
    %c0_i32_0 = arith.constant 0 : i32
    %c0_i32_1 = arith.constant 0 : i32
    return %c0_i32, %c0_i32_0 : i32, i32
  }
  func.func @transform_24(%arg0: i32) -> (i32, i32) {
    %c0_i32 = arith.constant 0 : i32
    %c0_i32_0 = arith.constant 0 : i32
    %c0_i32_1 = arith.constant 0 : i32
    return %c0_i32, %c0_i32_0 : i32, i32
  }
  func.func @transform_25(%arg0: i32) -> (i32, i32) {
    %c0_i32 = arith.constant 0 : i32
    %c0_i32_0 = arith.constant 0 : i32
    %c0_i32_1 = arith.constant 0 : i32
    return %c0_i32, %c0_i32_0 : i32, i32
  }
  func.func @transform_26(%arg0: i32) -> (i32, i32) {
    %c0_i32 = arith.constant 0 : i32
    %c0_i32_0 = arith.constant 0 : i32
    %c0_i32_1 = arith.constant 0 : i32
    return %c0_i32, %c0_i32_0 : i32, i32
  }
  func.func @transform_27(%arg0: i32) -> (i32, i32) {
    %c0_i32 = arith.constant 0 : i32
    %c0_i32_0 = arith.constant 0 : i32
    %c0_i32_1 = arith.constant 0 : i32
    return %c0_i32, %c0_i32_0 : i32, i32
  }
}

</mosaic_0001>

<bundles_post_ra>
// kernel: forward.1
= control target key start
LH: loop header
LB: loop body
LE: loop exit
PB: predicated region body
PF: predicated region fallthrough
CT: control target
= control target key end

     0   :  { %vm111_vm0 = vcmask 1046528   ;;  %vm127_vm1 = vcmask 261120   ;;  %vm370_vm2 = vcmask 1045504   ;;  %v4387_v50 = vmov 0.0   ;;  %s5301_s9 = inlined_call_operand.vmem [shape: f32[3,32,16], index: 9, kind: input, shape index: {}]   ;;  %s5302_s0 = inlined_call_operand.vmem [shape: f32[64,32], index: 0, kind: input, shape index: {}]   ;;  %s5303_s13 = inlined_call_operand.vmem [shape: f32[16,16], index: 13, kind: input, shape index: {}]   ;;  %s5304_s11 = inlined_call_operand.vmem [shape: f32[3,32,16], index: 11, kind: input, shape index: {}]   ;;  %s5305_s1 = inlined_call_operand.vmem [shape: f32[64,32], index: 1, kind: input, shape index: {}]   ;;  %s5306_s10 = inlined_call_operand.vmem [shape: f32[1,16], index: 10, kind: input, shape index: {}, may-alias: {10,12,14,16}]   ;;  %s5307_s15 = inlined_call_operand.vmem [shape: f32[16,16], index: 15, kind: input, shape index: {}]   ;;  %s5308_s17 = inlined_call_operand.vmem [shape: f32[32,32], index: 17, kind: input, shape index: {}]   ;;  %s5309_s12 = inlined_call_operand.vmem [shape: f32[1,16], index: 12, kind: input, shape index: {}, may-alias: {10,12,14,16}]   ;;  %s5310_s2 = inlined_call_operand.vmem [shape: f32[48,32], index: 2, kind: input, shape index: {}]   ;;  %s5311_s3 = inlined_call_operand.vmem [shape: f32[192,8], index: 3, kind: input, shape index: {}]   ;;  %s5312_s26 = inlined_call_operand.vmem [shape: f32[6,32], index: 26, kind: output, shape index: {2}]   ;;  %s5313_s18 = inlined_call_operand.vmem [shape: f32[32,8], index: 18, kind: input, shape index: {}]   ;;  %s5314_s20 = inlined_call_operand.vmem [shape: f32[8,32], index: 20, kind: input, shape index: {}]   ;;  %s5315_s19 = inlined_call_operand.vmem [shape: f32[1,8], index: 19, kind: input, shape index: {}]   ;;  %s5316_s4 = inlined_call_operand.vmem [shape: f32[4,6], index: 4, kind: input, shape index: {}]   ;;  %s5317_s21 = inlined_call_operand.vmem [shape: f32[48,1], index: 21, kind: input, shape index: {}]   ;;  %s5318_s14 = inlined_call_operand.vmem [shape: f32[1,16], index: 14, kind: input, shape index: {}, may-alias: {10,12,14,16}]   ;;  %s5319_s5 = inlined_call_operand.vmem [shape: f32[4,6], index: 5, kind: input, shape index: {}]   ;;  %s5320_s16 = inlined_call_operand.vmem [shape: f32[1,16], index: 16, kind: input, shape index: {}, may-alias: {10,12,14,16}]   ;;  %s5321_s23 = inlined_call_operand.vmem [shape: f32[48,10], index: 23, kind: input, shape index: {}]   ;;  %s5322_s22 = inlined_call_operand.<no memory space> [shape: f32[1,1], index: 22, kind: input, shape index: {}]   ;;  %s5323_s27 = inlined_call_operand.vmem [shape: f32[6,32], index: 27, kind: output, shape index: {3}]   ;;  %s5324_s6 = inlined_call_operand.vmem [shape: f32[4,1], index: 6, kind: input, shape index: {}]   ;;  %s5325_s7 = inlined_call_operand.vmem [shape: f32[4,1], index: 7, kind: input, shape index: {}]   ;;  %s5326_s8 = inlined_call_operand.vmem [shape: f32[4,1], index: 8, kind: input, shape index: {}]   ;;  %s5327_s24 = inlined_call_operand.vmem [shape: f32[4,1], index: 24, kind: output, shape index: {0}]   ;;  %s5328_s25 = inlined_call_operand.vmem [shape: f32[4,1], index: 25, kind: output, shape index: {1}]  }
   0x1   :  { %5339 = sst [smem:[#allocation4_spill]] %s5301_s9  ;;  %vm4388_vm3 = vmmov 0   ;;  %vm540_vm4 = vcmask 128000   ;;  %vm538_vm5 = vcmask 130048   ;;  %vm549_vm6 = vcmask 122880  }
   0x2   :  { %5340 = sst [smem:[#allocation5_spill]] %s5302_s0  ;;  %vm1471_vm7 = vcmask 57344   ;;  %vm1483_vm8 = vcmask 64512   ;;  %vm1569_vm9 = vcmask 253952   ;;  %vm2638_vm10 = vcmask 48128  }
   0x3   :  { %5341 = sst [smem:[#allocation6_spill]] %s5303_s13  ;;  %vm2635_vm11 = vcmask 259072   ;;  %vm3691_vm12 = vcmask 76800   ;;  %vm3701_vm13 = vcmask 3072  }
   0x4   :  { %5342 = sst [smem:[#allocation7_spill]] %s5304_s11 }
   0x5   :  { %5343 = sst [smem:[#allocation8_spill]] %s5305_s1 }
   0x6   :  { %5344 = sst [smem:[#allocation9_spill]] %s5306_s10 }
   0x7   :  { %5345 = sst [smem:[#allocation10_spill]] %s5307_s15 }
   0x8   :  { %5346 = sst [smem:[#allocation11_spill]] %s5308_s17 }
   0x9   :  { %5347 = sst [smem:[#allocation12_spill]] %s5309_s12 }
   0xa   :  { %5348 = sst [smem:[#allocation13_spill]] %s5310_s2 }
   0xb   :  { %5349 = sst [smem:[#allocation14_spill]] %s5311_s3 }
   0xc   :  { %5350 = sst [smem:[#allocation15_spill]] %s5312_s26 }
   0xd   :  { %s5351_s13 = sld [smem:[#allocation4_spill]] }
   0xe   :  { %s5352_s12 = sld [smem:[#allocation5_spill]] }
   0xf   :  { %s5353_s17 = sld [smem:[#allocation6_spill]] }
  0x10   :  { %s5354_s0 = sld [smem:[#allocation7_spill]] }
  0x11   :  { %s5355_s11 = sld [smem:[#allocation8_spill]] }
  0x12   :  { %s5356_s28 = sld [smem:[#allocation9_spill]] }
  0x13   :  { %v98_v0 = vld [vmem:[%s5351_s13 + $0x38] sm:$0xff]  ;;  %v97_v2 = vld [vmem:[%s5351_s13 + $0x30] sm:$0xff]  ;;  %v96_v4 = vld [vmem:[%s5351_s13 + $0x28] sm:$0xff]  ;;  %s5357_s29 = sld [smem:[#allocation10_spill]] }
  0x14   :  { %v94_v1 = vld [vmem:[%s5351_s13 + $0x18] sm:$0xff]  ;;  %4016 = vmatprep.subr.mxu0 %v98_v0  ;;  %v93_v3 = vld [vmem:[%s5351_s13 + $0x10] sm:$0xff]  ;;  %v92_v5 = vld [vmem:[%s5351_s13 + $0x8] sm:$0xff]  ;;  %s5358_s1 = sld [smem:[#allocation11_spill]] }
  0x15   :  { %4036 = vmatprep.subr.mxu1 %v94_v1  ;;  %4017 = vmatpush3.msra.mxu0 %v98_v0  ;;  %v4550_v6 = vld [vmem:[%s5352_s12] sm:$0xff]  ;;  %v4555_v7 = vld [vmem:[%s5352_s12 + $0x8] sm:$0xff]  ;;  %v4561_v9 = vld [vmem:[%s5352_s12 + $0x10] sm:$0xff]  ;;  %s5359_s30 = sld [smem:[#allocation12_spill]] }
  0x16   :  { %4037 = vmatpush3.msra.mxu1 %v94_v1  ;;  %4018 = vmatprep.subr.mxu0 %v97_v2  ;;  %v112_v8 = vrot.slane %v4550_v6, 1  ;;  %v4566_v10 = vld [vmem:[%s5352_s12 + $0x18] sm:$0xff]  ;;  %v95_v11 = vld [vmem:[%s5351_s13 + $0x20] sm:$0xff]  ;;  %v113_v13 = vrot.slane %v4555_v7, 1  ;;  %v115_v14 = vrot.slane %v4561_v9, 1  ;;  %v4585_v17 = vld [vmem:[%s5352_s12 + $0x28] sm:$0xff] }
  0x17   :  { %4038 = vmatprep.subr.mxu1 %v93_v3  ;;  %4019 = vmatpush3.msra.mxu0 %v97_v2  ;;  %v91_v12 = vld [vmem:[%s5351_s13] sm:$0xff]  ;;  %v117_v15 = vrot.slane %v4566_v10, 1  ;;  %v121_v22 = vrot.slane %v4585_v17, 1  ;;  %v89_v23 = vld [vmem:[%s5352_s12 + $0x30] sm:$0xff]  ;;  %v102_v24 = vld [vmem:[%s5351_s13 + $0x58] sm:$0xff]  ;;  %v371_v33 = vrot.slane %v4550_v6, 2 }
  0x18   :  { %4039 = vmatpush3.msra.mxu1 %v93_v3  ;;  %v4580_v16 = vld [vmem:[%s5352_s12 + $0x20] sm:$0xff]  ;;  %4020 = vmatprep.subr.mxu0 %v96_v4  ;;  %v114_v18 = vsel %vm111_vm0, %v112_v8, %v113_v13  ;;  %v116_v19 = vsel %vm111_vm0, %v113_v13, %v115_v14  ;;  %v90_v25 = vld [vmem:[%s5352_s12 + $0x38] sm:$0xff]  ;;  %v123_v27 = vrot.slane %v89_v23, 1  ;;  %v101_v30 = vld [vmem:[%s5351_s13 + $0x50] sm:$0xff]  ;;  %v372_v34 = vrot.slane %v4555_v7, 2  ;;  %s5360_s10 = sld [smem:[#allocation13_spill]] }
  0x19   :  { %4040 = vmatprep.subr.mxu1 %v92_v5  ;;  %4021 = vmatpush3.msra.mxu0 %v96_v4  ;;  %v119_v20 = vrot.slane %v4580_v16, 1  ;;  %v118_v21 = vsel %vm111_vm0, %v115_v14, %v117_v15  ;;  %v125_v29 = vrot.slane %v90_v25, 1  ;;  %v100_v35 = vld [vmem:[%s5351_s13 + $0x48] sm:$0xff]  ;;  %v374_v36 = vrot.slane %v4561_v9, 2  ;;  %v99_v37 = vld [vmem:[%s5351_s13 + $0x40] sm:$0xff]  ;;  %v4669_v53 = vld [vmem:[%s5354_s0 + $0x38] sm:$0xff] }
  0x1a   :  { %4041 = vmatpush3.msra.mxu1 %v92_v5  ;;  %4022 = vmatprep.subr.mxu0 %v95_v11  ;;  %v124_v31 = vsel %vm111_vm0, %v121_v22, %v123_v27  ;;  %v373_v38 = vsel %vm370_vm2, %v371_v33, %v372_v34  ;;  %v376_v39 = vrot.slane %v4566_v10, 2  ;;  %v378_v41 = vrot.slane %v4580_v16, 2  ;;  %v583_v51 = vld [vmem:[%s5353_s17 + $0x8] sm:$0xff]  ;;  %v582_v52 = vld [vmem:[%s5353_s17] sm:$0xff]  ;;  %v675_v54 = vld [vmem:[%s5354_s0 + $0x18] sm:$0xff]  ;;  %s5362_s26 = sld [smem:[#allocation15_spill]] }
  0x1b   :  { %4042 = vmatprep.subr.mxu1 %v91_v12  ;;  %4023 = vmatpush3.msra.mxu0 %v95_v11  ;;  %v120_v26 = vsel %vm111_vm0, %v117_v15, %v119_v20  ;;  %v122_v28 = vsel %vm111_vm0, %v119_v20, %v121_v22  ;;  %v126_v32 = vsel %vm111_vm0, %v123_v27, %v125_v29  ;;  %v380_v43 = vrot.slane %v4585_v17, 2  ;;  %v674_v55 = vld [vmem:[%s5354_s0 + $0x10] sm:$0xff]  ;;  %v673_v56 = vld [vmem:[%s5354_s0 + $0x8] sm:$0xff]  ;;  %v664_v57 = vld [vmem:[%s5355_s11] sm:$0xff] }
  0x1c   :  { %4024 = vmatprep.mubr.msk.f32.mxu0 %vm127_vm1, %v114_v18  ;;  %4043 = vmatpush3.msra.mxu1 %v91_v12  ;;  %v375_v40 = vsel %vm370_vm2, %v372_v34, %v374_v36  ;;  %v377_v42 = vsel %vm370_vm2, %v374_v36, %v376_v39  ;;  %v379_v44 = vsel %vm370_vm2, %v376_v39, %v378_v41  ;;  %v382_v45 = vrot.slane %v89_v23, 2  ;;  %v665_v58 = vld [vmem:[%s5355_s11 + $0x8] sm:$0xff]  ;;  %v666_v60 = vld [vmem:[%s5355_s11 + $0x10] sm:$0xff]  ;;  %v672_v61 = vld [vmem:[%s5354_s0] sm:$0xff] }
  0x1d   :  { %4044 = vmatprep.mubr.msk.f32.mxu1 %vm127_vm1, %v4550_v6  ;;  %4025 = vmatmul.mubr.msk.f32.vlgmr.msra.gmra.mxu0 %vm127_vm1, %v116_v19  ;;  %v381_v46 = vsel %vm370_vm2, %v378_v41, %v380_v43  ;;  %v384_v47 = vrot.slane %v90_v25, 2  ;;  %v692_v59 = vrot.slane %v664_v57, 1  ;;  %v693_v62 = vrot.slane %v665_v58, 1  ;;  %v667_v2 = vld [vmem:[%s5355_s11 + $0x18] sm:$0xff]  ;;  %v668_v4 = vld [vmem:[%s5355_s11 + $0x20] sm:$0xff]  ;;  %v669_v8 = vld [vmem:[%s5355_s11 + $0x28] sm:$0xff] }
  0x1e   :  { %4045 = vmatmul.mubr.msk.f32.vlgmr.msra.gmra.mxu1 %vm127_vm1, %v4555_v7  ;;  %4027 = vmatprep.mubr.msk.f32.mxu0 %vm127_vm1, %v118_v21  ;;  %v383_v48 = vsel %vm370_vm2, %v380_v43, %v382_v45  ;;  %v695_v63 = vrot.slane %v666_v60, 1  ;;  %v697_v3 = vrot.slane %v667_v2, 1  ;;  %v699_v5 = vrot.slane %v668_v4, 1  ;;  %v4733_v14 = vld [vmem:[%s5355_s11 + $0x38] sm:$0xff] }
  0x1f   :  { %4047 = vmatprep.mubr.msk.f32.mxu1 %vm127_vm1, %v4561_v9  ;;  %4056 = vmatprep.subr.mxu0 %v102_v24  ;;  %v385_v49 = vsel %vm370_vm2, %v382_v45, %v384_v47  ;;  %v4696_v0 = vsel %vm111_vm0, %v692_v59, %v693_v62  ;;  %v701_v9 = vrot.slane %v669_v8, 1  ;;  %v705_v15 = vrot.slane %v4733_v14, 1 }
  0x20   :  { %4057 = vmatpush3.msra.mxu0 %v102_v24  ;;  %4076 = vmatprep.subr.mxu1 %v4387_v50  ;;  %v4699_v1 = vsel %vm111_vm0, %v693_v62, %v695_v63  ;;  %v4711_v6 = vsel %vm111_vm0, %v695_v63, %v697_v3  ;;  %v4714_v7 = vsel %vm111_vm0, %v697_v3, %v699_v5  ;;  %v950_v18 = vrot.slane %v665_v58, 2 }
  0x21   :  { %4028 = vmatmul.mubr.msk.f32.gmra.mxu0 %vm127_vm1, %v120_v26  ;;  %4058 = vmatprep.subr.mxu0 %v101_v30  ;;  %v4725_v12 = vsel %vm111_vm0, %v699_v5, %v701_v9  ;;  %v952_v19 = vrot.slane %v666_v60, 2  ;;  %v954_v22 = vrot.slane %v667_v2, 2  ;;  %v958_v26 = vrot.slane %v669_v8, 2 }
  0x22   :  { %4048 = vmatmul.mubr.msk.f32.gmra.mxu1 %vm127_vm1, %v4566_v10  ;;  %4030 = vmatprep.mubr.msk.f32.mxu0 %vm127_vm1, %v122_v28  ;;  %v670_v10 = vld [vmem:[%s5355_s11 + $0x30] sm:$0xff] }
  0x23   :  { %4050 = vmatprep.mubr.msk.f32.mxu1 %vm127_vm1, %v4580_v16  ;;  %4059 = vmatpush3.msra.mxu0 %v101_v30  ;;  %v703_v11 = vrot.slane %v670_v10, 1  ;;  %v4751_v21 = vsel %vm370_vm2, %v950_v18, %v952_v19  ;;  %v4754_v24 = vsel %vm370_vm2, %v952_v19, %v954_v22  ;;  %v960_v27 = vrot.slane %v670_v10, 2 }
  0x24   :  { %4060 = vmatprep.subr.mxu0 %v100_v35  ;;  %4077 = vmatpush3.msra.mxu1 %v583_v51  ;;  %v962_v30 = vrot.slane %v4733_v14, 2 }
  0x25   :  { %4031 = vmatmul.mubr.msk.f32.gmra.mxu0 %vm127_vm1, %v124_v31  ;;  %4078 = vmatprep.subr.mxu1 %v4387_v50  ;;  %v4728_v13 = vsel %vm111_vm0, %v701_v9, %v703_v11  ;;  %v4741_v16 = vsel %vm111_vm0, %v703_v11, %v705_v15 }
  0x26   :  { %4051 = vmatmul.mubr.msk.f32.gmra.mxu1 %vm127_vm1, %v4585_v17  ;;  %4033 = vmatprep.mubr.msk.f32.mxu0 %vm127_vm1, %v126_v32  ;;  %v949_v17 = vrot.slane %v664_v57, 2  ;;  %v4769_v31 = vsel %vm370_vm2, %v960_v27, %v962_v30 }
  0x27   :  { %4053 = vmatprep.mubr.msk.f32.mxu1 %vm127_vm1, %v89_v23  ;;  %4061 = vmatpush3.msra.mxu0 %v100_v35  ;;  %v956_v23 = vrot.slane %v668_v4, 2 }
  0x28   :  { %4062 = vmatprep.subr.mxu0 %v99_v37  ;;  %4079 = vmatpush3.msra.mxu1 %v582_v52  ;;  %v4748_v20 = vsel %vm370_vm2, %v949_v17, %v950_v18 }
  0x29   :  { %4034 = vmatmul.mubr.msk.f32.gmra.mxu0 %vm127_vm1, %v125_v29  ;;  %4083 = vmatprep.subr.mxu1 %v4669_v53  ;;  %v4760_v28 = vsel %vm370_vm2, %v956_v23, %v958_v26  ;;  %v4763_v29 = vsel %vm370_vm2, %v958_v26, %v960_v27 }
  0x2a   :  { %4054 = vmatmul.mubr.msk.f32.gmra.mxu1 %vm127_vm1, %v90_v25  ;;  %4064 = vmatprep.mubr.msk.f32.mxu0 %vm127_vm1, %v373_v38  ;;  %v4757_v25 = vsel %vm370_vm2, %v954_v22, %v956_v23 }
  0x2b   :  { %4063 = vmatpush3.msra.mxu0 %v99_v37  ;;  %4080 = vmatprep.mubr.msk.f32.mxu1 %vm4388_vm3, %v4387_v50 }
  0x2c   :  { %4103 = vmatprep.subr.mxu0 %v675_v54 }
  0x2d   :  { %4065 = vmatmul.mubr.msk.f32.vlgmr.msra.gmra.mxu0 %vm127_vm1, %v375_v40 }
  0x2e   :  { %4067 = vmatprep.mubr.msk.f32.mxu0 %vm127_vm1, %v377_v42  ;;  %4104 = vmatpush3.msra.mxu0 %v675_v54 }
  0x2f   :  { %4105 = vmatprep.subr.mxu0 %v674_v55 }
  0x30   :  { %4106 = vmatpush3.msra.mxu0 %v674_v55 }
  0x31   :  { %4068 = vmatmul.mubr.msk.f32.gmra.mxu0 %vm127_vm1, %v379_v44  ;;  %4107 = vmatprep.subr.mxu0 %v673_v56 }
  0x32   :  { %4070 = vmatprep.mubr.msk.f32.mxu0 %vm127_vm1, %v381_v46  ;;  %4108 = vmatpush3.msra.mxu0 %v673_v56 }
  0x33   :  { %4109 = vmatprep.subr.mxu0 %v672_v61 }
  0x34   :  { %4110 = vmatpush3.msra.mxu0 %v672_v61 }
  0x35   :  { %4071 = vmatmul.mubr.msk.f32.gmra.mxu0 %vm127_vm1, %v383_v48  ;;  %4143 = vmatprep.subr.mxu0 %v4387_v50 }
  0x36   :  { %4073 = vmatprep.mubr.msk.f32.mxu0 %vm127_vm1, %v385_v49 }
  0x39   :  { %4074 = vmatmul.mubr.msk.f32.gmra.mxu0 %vm127_vm1, %v384_v47  ;;  %v3747_v47 = vld [vmem:[%s5356_s28] ss:$0 sm:$0xff]  ;;  %s5361_s28 = sld [smem:[#allocation14_spill]] }
  0x3a   :  { %4111 = vmatprep.mubr.msk.f32.mxu0 %vm127_vm1, %v664_v57 }
  0x3d   :  { %4112 = vmatmul.mubr.msk.f32.vlgmr.msra.gmra.mxu0 %vm127_vm1, %v665_v58 }
  0x3e   :  { %4114 = vmatprep.mubr.msk.f32.mxu0 %vm127_vm1, %v666_v60 }
  0x41   :  { %4115 = vmatmul.mubr.msk.f32.gmra.mxu0 %vm127_vm1, %v667_v2 }
  0x42   :  { %4117 = vmatprep.mubr.msk.f32.mxu0 %vm127_vm1, %v668_v4 }
  0x45   :  { %4118 = vmatmul.mubr.msk.f32.gmra.mxu0 %vm127_vm1, %v669_v8 }
  0x46   :  { %4120 = vmatprep.mubr.msk.f32.mxu0 %vm127_vm1, %v670_v10 }
  0x49   :  { %4121 = vmatmul.mubr.msk.f32.gmra.mxu0 %vm127_vm1, %v4733_v14 }
  0x4a   :  { %4147 = vmatprep.mubr.msk.f32.mxu0 %vm4388_vm3, %v4387_v50 }
  0xdd   :  { %v4026_v32 = vpop.f32.mrf.mxu0 }
  0xde   :  { %v4046_v33 = vpop.f32.mrf.mxu1 }
  0xdf   :  { %v210_v34 = vpop.f32.mrf.mxu0  ;;  %v337_v45 = vadd.f32 %v4046_v33, %v4026_v32 }
  0xe0   :  { %v331_v35 = vpop.f32.mrf.mxu1 }
  0xe1   :  { %v4029_v36 = vpop.f32.mrf.mxu0  ;;  %v332_v48 = vadd.f32 %v331_v35, %v210_v34 }
  0xe2   :  { %v4049_v37 = vpop.f32.mrf.mxu1 }
  0xe3   :  { %v220_v38 = vpop.f32.mrf.mxu0  ;;  %v347_v54 = vadd.f32 %v4049_v37, %v4029_v36 }
  0xe4   :  { %v341_v40 = vpop.f32.mrf.mxu1 }
  0xe5   :  { %v4032_v39 = vpop.f32.mrf.mxu0  ;;  %v342_v58 = vadd.f32 %v341_v40, %v220_v38 }
  0xe6   :  { %v4052_v43 = vpop.f32.mrf.mxu1 }
  0xe7   :  { %v230_v41 = vpop.f32.mrf.mxu0  ;;  %v357_v2 = vadd.f32 %v4052_v43, %v4032_v39 }
  0xe8   :  { %v351_v49 = vpop.f32.mrf.mxu1 }
  0xe9   :  { %v4035_v42 = vpop.f32.mrf.mxu0  ;;  %v352_v8 = vadd.f32 %v351_v49, %v230_v41 }
  0xea   :  { %v4055_v59 = vpop.f32.mrf.mxu1 }
  0xeb   :  { %v240_v44 = vpop.f32.mrf.mxu0  ;;  %v367_v27 = vadd.f32 %v4055_v59, %v4035_v42 }
  0xec   :  { %v361_v11 = vpop.f32.mrf.mxu1 }
  0xed   :  { %v4066_v46 = vpop.f32.mrf.mxu0  ;;  %v362_v35 = vadd.f32 %v361_v11, %v240_v44 }
  0xee   :  { %v508_v51 = vadd.f32 %v4066_v46, %v337_v45 }
  0xef   :  { %v468_v52 = vpop.f32.mrf.mxu0 }
  0xf0   :  { %v523_v55 = vadd.f32 %v3747_v47, %v508_v51  ;;  %v507_v56 = vadd.f32 %v468_v52, %v332_v48 }
  0xf1   :  { %v4069_v57 = vpop.f32.mrf.mxu0 }
  0xf2   :  { %v531_v60 = vmax.f32 %v523_v55, 0.0  ;;  %v522_v61 = vadd.f32 %v3747_v47, %v507_v56  ;;  %v510_v62 = vadd.f32 %v4069_v57, %v347_v54 }
  0xf3   :  { %v478_v63 = vpop.f32.mrf.mxu0 }
  0xf4   :  { %v530_v3 = vmax.f32 %v522_v61, 0.0  ;;  %v525_v4 = vadd.f32 %v3747_v47, %v510_v62  ;;  %v509_v5 = vadd.f32 %v478_v63, %v342_v58  ;;  %v541_v9 = vsel %vm540_vm4, %v531_v60, -inf }
  0xf5   :  { %v4072_v10 = vpop.f32.mrf.mxu0 }
  0xf6   :  { %v539_v17 = vsel %vm538_vm5, %v530_v3, -inf  ;;  %v533_v18 = vmax.f32 %v525_v4, 0.0  ;;  %v524_v19 = vadd.f32 %v3747_v47, %v509_v5  ;;  %v512_v22 = vadd.f32 %v4072_v10, %v357_v2 }
  0xf7   :  { %v542_v23 = vmax.f32 %v539_v17, %v541_v9  ;;  %v488_v26 = vpop.f32.mrf.mxu0 }
  0xf8   :  { %v532_v32 = vmax.f32 %v524_v19, 0.0  ;;  %v527_v33 = vadd.f32 %v3747_v47, %v512_v22  ;;  %v511_v34 = vadd.f32 %v488_v26, %v352_v8  ;;  %v552_v37 = vsel %vm540_vm4, %v533_v18, -inf }
  0xf9   :  { %v543_v36 = vrot.slane %v542_v23, 4  ;;  %v4075_v38 = vpop.f32.mrf.mxu0 }
  0xfa   :  { %v551_v39 = vsel %vm538_vm5, %v532_v32, -inf  ;;  %v535_v40 = vmax.f32 %v527_v33, 0.0  ;;  %v526_v41 = vadd.f32 %v3747_v47, %v511_v34  ;;  %v514_v43 = vadd.f32 %v4075_v38, %v367_v27  ;;  %v676_v38 = vld [vmem:[%s5354_s0 + $0x20] sm:$0xff] }
  0xfb   :  { %v544_v45 = vmax.f32 %v542_v23, %v543_v36  ;;  %v553_v46 = vmax.f32 %v551_v39, %v552_v37  ;;  %v498_v48 = vpop.f32.mrf.mxu0  ;;  %v678_v36 = vld [vmem:[%s5354_s0 + $0x30] sm:$0xff]  ;;  %v677_v37 = vld [vmem:[%s5354_s0 + $0x28] sm:$0xff]  ;;  %v683_v39 = vld [vmem:[%s5354_s0 + $0x58] sm:$0xff] }
  0xfc   :  { %v534_v49 = vmax.f32 %v526_v41, 0.0  ;;  %v529_v51 = vadd.f32 %v3747_v47, %v514_v43  ;;  %v513_v52 = vadd.f32 %v498_v48, %v362_v35  ;;  %v562_v55 = vsel %vm540_vm4, %v535_v40, -inf  ;;  %v680_v40 = vld [vmem:[%s5354_s0 + $0x40] sm:$0xff] }
  0xfd   :  { %v545_v42 = vrot.slane %v544_v45, 2  ;;  %v554_v54 = vrot.slane %v553_v46, 4  ;;  %v4113_v14 = vpop.f32.mrf.mxu0  ;;  %v3774_v48 = vld [vmem:[%s5359_s30] ss:$0 sm:$0xff] }
  0xfe   :  { %v561_v44 = vsel %vm538_vm5, %v534_v49, -inf  ;;  %v537_v56 = vmax.f32 %v529_v51, 0.0  ;;  %v528_v57 = vadd.f32 %v3747_v47, %v513_v52 }
  0xff   :  { %v546_v58 = vmax.f32 %v544_v45, %v545_v42  ;;  %v555_v59 = vmax.f32 %v553_v46, %v554_v54  ;;  %v563_v60 = vmax.f32 %v561_v44, %v562_v55 }
 0x100   :  { %v536_v61 = vmax.f32 %v528_v57, 0.0  ;;  %v572_v3 = vsel %vm540_vm4, %v537_v56, -inf }
 0x101   :  { %v547_v62 = vrot.slane %v546_v58, 1  ;;  %v556_v63 = vrot.slane %v555_v59, 2  ;;  %v564_v2 = vrot.slane %v563_v60, 4 }
 0x102   :  { %v571_v4 = vsel %vm538_vm5, %v536_v61, -inf }
 0x103   :  { %v548_v5 = vmax.f32 %v546_v58, %v547_v62  ;;  %v557_v8 = vmax.f32 %v555_v59, %v556_v63  ;;  %v565_v9 = vmax.f32 %v563_v60, %v564_v2  ;;  %v573_v10 = vmax.f32 %v571_v4, %v572_v3 }
 0x105   :  { %550 = vst.msk [vmem:[#allocation2] sm:$0x1] %vm549_vm6, %v548_v5  ;;  %v558_v11 = vrot.slane %v557_v8, 1  ;;  %v566_v47 = vrot.slane %v565_v9, 2  ;;  %v574_v17 = vrot.slane %v573_v10, 4 }
 0x107   :  { %v559_v18 = vmax.f32 %v557_v8, %v558_v11  ;;  %v567_v19 = vmax.f32 %v565_v9, %v566_v47  ;;  %v575_v22 = vmax.f32 %v573_v10, %v574_v17 }
 0x109   :  { %560 = vst.msk [vmem:[#allocation2 + $0x1] sm:$0x1] %vm549_vm6, %v559_v18  ;;  %v568_v23 = vrot.slane %v567_v19, 1  ;;  %v576_v26 = vrot.slane %v575_v22, 2 }
 0x10b   :  { %v569_v27 = vmax.f32 %v567_v19, %v568_v23  ;;  %v577_v32 = vmax.f32 %v575_v22, %v576_v26 }
 0x10d   :  { %570 = vst.msk [vmem:[#allocation2 + $0x2] sm:$0x1] %vm549_vm6, %v569_v27  ;;  %v578_v33 = vrot.slane %v577_v32, 1 }
 0x10f   :  { %v579_v34 = vmax.f32 %v577_v32, %v578_v33 }
 0x111   :  { %580 = vst.msk [vmem:[#allocation2 + $0x3] sm:$0x1] %vm549_vm6, %v579_v34 }
 0x118   :  { %v581_v35 = vld [vmem:[#allocation2] sm:$0xf] }
 0x119   :  { %4081 = vmatmul.mubr.msk.f32.vlgmr.msra.gmra.mxu1 %vm538_vm5, %v581_v35 }
 0x11a   :  { %4084 = vmatpush3.msra.mxu1 %v4669_v53  ;;  %4091 = vmatprep.mubr.msk.f32.mxu1 %vm127_vm1, %v4696_v0  ;;  %v682_v53 = vld [vmem:[%s5354_s0 + $0x50] sm:$0xff]  ;;  %v681_v0 = vld [vmem:[%s5354_s0 + $0x48] sm:$0xff] }
 0x11b   :  { %4085 = vmatprep.subr.mxu1 %v678_v36 }
 0x11c   :  { %4086 = vmatpush3.msra.mxu1 %v678_v36 }
 0x11d   :  { %4087 = vmatprep.subr.mxu1 %v677_v37 }
 0x11e   :  { %4088 = vmatpush3.msra.mxu1 %v677_v37 }
 0x11f   :  { %4089 = vmatprep.subr.mxu1 %v676_v38 }
 0x120   :  { %4090 = vmatpush3.msra.mxu1 %v676_v38 }
 0x121   :  { %4092 = vmatmul.mubr.msk.f32.vlgmr.msra.gmra.mxu1 %vm127_vm1, %v4699_v1  ;;  %4123 = vmatprep.subr.mxu1 %v683_v39  ;;  %v1158_v1 = vld [vmem:[%s5357_s29 + $0x8] sm:$0xff] }
 0x122   :  { %4094 = vmatprep.mubr.msk.f32.mxu1 %vm127_vm1, %v4711_v6  ;;  %4124 = vmatpush3.msra.mxu1 %v683_v39  ;;  %v1157_v6 = vld [vmem:[%s5357_s29] sm:$0xff] }
 0x123   :  { %4125 = vmatprep.subr.mxu1 %v682_v53  ;;  %4144 = vmatpush3.msra.mxu0 %v1158_v1 }
 0x124   :  { %4126 = vmatpush3.msra.mxu1 %v682_v53  ;;  %4145 = vmatprep.subr.mxu0 %v4387_v50 }
 0x125   :  { %4095 = vmatmul.mubr.msk.f32.gmra.mxu1 %vm127_vm1, %v4714_v7  ;;  %4127 = vmatprep.subr.mxu1 %v681_v0  ;;  %v4855_v7 = vld [vmem:[%s5358_s1 + $0x18] sm:$0xff] }
 0x126   :  { %4097 = vmatprep.mubr.msk.f32.mxu1 %vm127_vm1, %v4725_v12  ;;  %4128 = vmatpush3.msra.mxu1 %v681_v0 }
 0x127   :  { %4129 = vmatprep.subr.mxu1 %v680_v40  ;;  %4146 = vmatpush3.msra.mxu0 %v1157_v6 }
 0x128   :  { %4130 = vmatpush3.msra.mxu1 %v680_v40  ;;  %4150 = vmatprep.subr.mxu0 %v4855_v7 }
 0x129   :  { %4098 = vmatmul.mubr.msk.f32.gmra.mxu1 %vm127_vm1, %v4728_v13  ;;  %4167 = vmatprep.subr.mxu1 %v4387_v50 }
 0x12a   :  { %4100 = vmatprep.mubr.msk.f32.mxu1 %vm127_vm1, %v4741_v16  ;;  %v910_v16 = vpop.f32.mrf.mxu0 }
 0x12d   :  { %4101 = vmatmul.mubr.msk.f32.gmra.mxu1 %vm127_vm1, %v705_v15 }
 0x12e   :  { %4131 = vmatprep.mubr.msk.f32.mxu1 %vm127_vm1, %v4748_v20 }
 0x131   :  { %4132 = vmatmul.mubr.msk.f32.vlgmr.msra.gmra.mxu1 %vm127_vm1, %v4751_v21 }
 0x132   :  { %4134 = vmatprep.mubr.msk.f32.mxu1 %vm127_vm1, %v4754_v24  ;;  %v4116_v24 = vpop.f32.mrf.mxu0 }
 0x135   :  { %4135 = vmatmul.mubr.msk.f32.gmra.mxu1 %vm127_vm1, %v4757_v25 }
 0x136   :  { %4137 = vmatprep.mubr.msk.f32.mxu1 %vm127_vm1, %v4760_v28 }
 0x139   :  { %4138 = vmatmul.mubr.msk.f32.gmra.mxu1 %vm127_vm1, %v4763_v29  ;;  %v920_v29 = vpop.f32.mrf.mxu0 }
 0x13a   :  { %4140 = vmatprep.mubr.msk.f32.mxu1 %vm127_vm1, %v4769_v31 }
 0x13b   :  { %v4119_v41 = vpop.f32.mrf.mxu0 }
 0x13d   :  { %4141 = vmatmul.mubr.msk.f32.gmra.mxu1 %vm127_vm1, %v962_v30  ;;  %v930_v51 = vpop.f32.mrf.mxu0 }
 0x13e   :  { %4169 = vmatprep.mubr.msk.f32.mxu1 %vm4388_vm3, %v4387_v50 }
 0x13f   :  { %v4122_v58 = vpop.f32.mrf.mxu0 }
 0x141   :  { %v940_v10 = vpop.f32.mrf.mxu0 }
 0x1d9   :  { %v4859_v12 = vpop.f32.mrf.mxu1 }
 0x1db   :  { %v4082_v13 = vpop.f32.mrf.mxu1 }
 0x1e1   :  { %v4093_v15 = vpop.f32.mrf.mxu1 }
 0x1e2   :  { %v916_v45 = vadd.f32 %v4113_v14, %v4093_v15 }
 0x1e3   :  { %v789_v20 = vpop.f32.mrf.mxu1 }
 0x1e4   :  { %v911_v49 = vadd.f32 %v910_v16, %v789_v20 }
 0x1e5   :  { %v4096_v21 = vpop.f32.mrf.mxu1 }
 0x1e6   :  { %v926_v54 = vadd.f32 %v4116_v24, %v4096_v21 }
 0x1e7   :  { %v799_v25 = vpop.f32.mrf.mxu1 }
 0x1e8   :  { %v921_v57 = vadd.f32 %v920_v29, %v799_v25 }
 0x1e9   :  { %v4099_v28 = vpop.f32.mrf.mxu1 }
 0x1ea   :  { %v936_v63 = vadd.f32 %v4119_v41, %v4099_v28 }
 0x1eb   :  { %v809_v30 = vpop.f32.mrf.mxu1 }
 0x1ec   :  { %v931_v5 = vadd.f32 %v930_v51, %v809_v30 }
 0x1ed   :  { %v4102_v31 = vpop.f32.mrf.mxu1 }
 0x1ee   :  { %v946_v23 = vadd.f32 %v4122_v58, %v4102_v31 }
 0x1ef   :  { %v819_v43 = vpop.f32.mrf.mxu1 }
 0x1f0   :  { %v941_v33 = vadd.f32 %v940_v10, %v819_v43  ;;  %v1240_v10 = vld [vmem:[%s5360_s10 + $0x8] sm:$0xff] }
 0x1f1   :  { %v4133_v46 = vpop.f32.mrf.mxu1 }
 0x1f2   :  { %v1086_v52 = vadd.f32 %v4133_v46, %v916_v45 }
 0x1f3   :  { %v1046_v42 = vpop.f32.mrf.mxu1 }
 0x1f4   :  { %v1101_v55 = vadd.f32 %v3774_v48, %v1086_v52  ;;  %v1085_v44 = vadd.f32 %v1046_v42, %v911_v49 }
 0x1f5   :  { %v4136_v56 = vpop.f32.mrf.mxu1 }
 0x1f6   :  { %v1109_v59 = vmax.f32 %v1101_v55, 0.0  ;;  %v1100_v60 = vadd.f32 %v3774_v48, %v1085_v44  ;;  %v1088_v61 = vadd.f32 %v4136_v56, %v926_v54 }
 0x1f7   :  { %v1056_v62 = vpop.f32.mrf.mxu1 }
 0x1f8   :  { %v1108_v2 = vmax.f32 %v1100_v60, 0.0  ;;  %v1103_v3 = vadd.f32 %v3774_v48, %v1088_v61  ;;  %v1087_v4 = vadd.f32 %v1056_v62, %v921_v57  ;;  %v1117_v8 = vsel %vm540_vm4, %v1109_v59, -inf }
 0x1f9   :  { %v4139_v9 = vpop.f32.mrf.mxu1 }
 0x1fa   :  { %v1116_v11 = vsel %vm538_vm5, %v1108_v2, -inf  ;;  %v1111_v47 = vmax.f32 %v1103_v3, 0.0  ;;  %v1102_v17 = vadd.f32 %v3774_v48, %v1087_v4  ;;  %v1090_v18 = vadd.f32 %v4139_v9, %v936_v63  ;;  %v1239_v3 = vld [vmem:[%s5360_s10] sm:$0xff] }
 0x1fb   :  { %v1118_v19 = vmax.f32 %v1116_v11, %v1117_v8  ;;  %v1066_v22 = vpop.f32.mrf.mxu1  ;;  %v1270_v8 = vld [vmem:[%s5358_s1 + $0x8] sm:$0xff]  ;;  %v1269_v9 = vld [vmem:[%s5358_s1] sm:$0xff] }
 0x1fc   :  { %v1110_v26 = vmax.f32 %v1102_v17, 0.0  ;;  %v1105_v27 = vadd.f32 %v3774_v48, %v1090_v18  ;;  %v1089_v32 = vadd.f32 %v1066_v22, %v931_v5  ;;  %v1127_v35 = vsel %vm540_vm4, %v1111_v47, -inf  ;;  %v1271_v5 = vld [vmem:[%s5358_s1 + $0x10] sm:$0xff] }
 0x1fd   :  { %v1119_v34 = vrot.slane %v1118_v19, 4  ;;  %v4142_v36 = vpop.f32.mrf.mxu1  ;;  %v1571_v47 = vsel %vm127_vm1, %v1240_v10, 0.0 }
 0x1fe   :  { %v1126_v37 = vsel %vm538_vm5, %v1110_v26, -inf  ;;  %v1113_v38 = vmax.f32 %v1105_v27, 0.0  ;;  %v1104_v39 = vadd.f32 %v3774_v48, %v1089_v32  ;;  %v1092_v53 = vadd.f32 %v4142_v36, %v946_v23 }
 0x1ff   :  { %v1120_v0 = vmax.f32 %v1118_v19, %v1119_v34  ;;  %v1128_v40 = vmax.f32 %v1126_v37, %v1127_v35  ;;  %v1076_v1 = vpop.f32.mrf.mxu1  ;;  %v1572_v18 = vrot.slane %v1571_v47, 4 }
 0x200   :  { %v1112_v6 = vmax.f32 %v1104_v39, 0.0  ;;  %v1107_v13 = vadd.f32 %v3774_v48, %v1092_v53  ;;  %v1091_v14 = vadd.f32 %v1076_v1, %v941_v33  ;;  %v1137_v20 = vsel %vm540_vm4, %v1113_v38, -inf  ;;  %v1242_v1 = vld [vmem:[%s5360_s10 + $0x18] sm:$0xff] }
 0x201   :  { %v1121_v15 = vrot.slane %v1120_v0, 2  ;;  %v1129_v16 = vrot.slane %v1128_v40, 4  ;;  %v1573_v22 = vadd.f32 %v1572_v18, %v1571_v47 }
 0x202   :  { %v1136_v21 = vsel %vm538_vm5, %v1112_v6, -inf  ;;  %v1115_v24 = vmax.f32 %v1107_v13, 0.0  ;;  %v1106_v25 = vadd.f32 %v3774_v48, %v1091_v14 }
 0x203   :  { %v1122_v28 = vmax.f32 %v1120_v0, %v1121_v15  ;;  %v1130_v29 = vmax.f32 %v1128_v40, %v1129_v16  ;;  %v1138_v30 = vmax.f32 %v1136_v21, %v1137_v20  ;;  %v1574_v26 = vrot.slane %v1573_v22, 2  ;;  %v1241_v40 = vld [vmem:[%s5360_s10 + $0x10] sm:$0xff] }
 0x204   :  { %v1114_v31 = vmax.f32 %v1106_v25, 0.0  ;;  %v1147_v46 = vsel %vm540_vm4, %v1115_v24, -inf }
 0x205   :  { %v1123_v41 = vrot.slane %v1122_v28, 1  ;;  %v1131_v43 = vrot.slane %v1130_v29, 2  ;;  %v1139_v45 = vrot.slane %v1138_v30, 4  ;;  %v1575_v33 = vadd.f32 %v1574_v26, %v1573_v22 }
 0x206   :  { %v1146_v49 = vsel %vm538_vm5, %v1114_v31, -inf }
 0x207   :  { %v1124_v51 = vmax.f32 %v1122_v28, %v1123_v41  ;;  %v1132_v52 = vmax.f32 %v1130_v29, %v1131_v43  ;;  %v1140_v42 = vmax.f32 %v1138_v30, %v1139_v45  ;;  %v1148_v54 = vmax.f32 %v1146_v49, %v1147_v46  ;;  %v1248_v46 = vld [vmem:[%s5361_s28 + $0x18] sm:$0xff] }
 0x208   :  { %v1576_v36 = vrot.slane %v1575_v33, 1  ;;  %v1252_v49 = vld [vmem:[%s5361_s28 + $0x38] sm:$0xff] }
 0x209   :  { %1125 = vst.msk [vmem:[#allocation2] sm:$0x1] %vm549_vm6, %v1124_v51  ;;  %v1133_v55 = vrot.slane %v1132_v52, 1  ;;  %v1141_v44 = vrot.slane %v1140_v42, 2  ;;  %v1149_v48 = vrot.slane %v1148_v54, 4  ;;  %v1247_v51 = vld [vmem:[%s5361_s28 + $0x10] sm:$0xff] }
 0x20a   :  { %v1577_v39 = vadd.f32 %v1576_v36, %v1575_v33 }
 0x20b   :  { %v1134_v56 = vmax.f32 %v1132_v52, %v1133_v55  ;;  %v1142_v57 = vmax.f32 %v1140_v42, %v1141_v44  ;;  %v1150_v58 = vmax.f32 %v1148_v54, %v1149_v48  ;;  %v1251_v52 = vld [vmem:[%s5361_s28 + $0x30] sm:$0xff]  ;;  %v1246_v42 = vld [vmem:[%s5361_s28 + $0x8] sm:$0xff]  ;;  %v4949_v54 = vld [vmem:[%s5360_s10 + $0x20] sm:$0xff] }
 0x20c   :  { %v1578_v0 = vmul.f32 0.125, %v1577_v39  ;;  %v4957_v55 = vld [vmem:[%s5360_s10 + $0x28] sm:$0xff]  ;;  %v1245_v48 = vld [vmem:[%s5361_s28] sm:$0xff] }
 0x20d   :  { %1135 = vst.msk [vmem:[#allocation2 + $0x1] sm:$0x1] %vm549_vm6, %v1134_v56  ;;  %v1143_v59 = vrot.slane %v1142_v57, 1  ;;  %v1151_v60 = vrot.slane %v1150_v58, 2  ;;  %v1250_v44 = vld [vmem:[%s5361_s28 + $0x28] sm:$0xff]  ;;  %v1249_v56 = vld [vmem:[%s5361_s28 + $0x20] sm:$0xff] }
 0x20f   :  { %v1144_v61 = vmax.f32 %v1142_v57, %v1143_v59  ;;  %v1152_v62 = vmax.f32 %v1150_v58, %v1151_v60  ;;  %v1752_v57 = vsel %vm127_vm1, %v1241_v40, 0.0  ;;  %v1933_v59 = vsel %vm127_vm1, %v1242_v1, 0.0 }
 0x210   :  { %v1753_v58 = vrot.slane %v1752_v57, 4 }
 0x211   :  { %1145 = vst.msk [vmem:[#allocation2 + $0x2] sm:$0x1] %vm549_vm6, %v1144_v61  ;;  %v1153_v63 = vrot.slane %v1152_v62, 1  ;;  %v1934_v61 = vrot.slane %v1933_v59, 4 }
 0x212   :  { %v1754_v60 = vadd.f32 %v1753_v58, %v1752_v57 }
 0x213   :  { %v1154_v2 = vmax.f32 %v1152_v62, %v1153_v63 }
 0x214   :  { %v1755_v63 = vrot.slane %v1754_v60, 2 }
 0x215   :  { %1155 = vst.msk [vmem:[#allocation2 + $0x3] sm:$0x1] %vm549_vm6, %v1154_v2  ;;  %v1935_v2 = vadd.f32 %v1934_v61, %v1933_v59 }
 0x21c   :  { %v1156_v4 = vld [vmem:[#allocation2] sm:$0xf] }
 0x21d   :  { %4148 = vmatmul.mubr.msk.f32.vlgmr.msra.gmra.mxu0 %vm538_vm5, %v1156_v4  ;;  %v1756_v4 = vadd.f32 %v1755_v63, %v1754_v60 }
 0x21e   :  { %4151 = vmatpush3.msra.mxu0 %v4855_v7  ;;  %4158 = vmatprep.mubr.msk.f32.mxu0 %vm127_vm1, %v1239_v3  ;;  %v1386_v7 = vsel %vm127_vm1, %v1239_v3, 0.0 }
 0x21f   :  { %4152 = vmatprep.subr.mxu0 %v1271_v5  ;;  %v1387_v11 = vrot.slane %v1386_v7, 4 }
 0x220   :  { %4153 = vmatpush3.msra.mxu0 %v1271_v5  ;;  %v1936_v5 = vrot.slane %v1935_v2, 2 }
 0x221   :  { %4154 = vmatprep.subr.mxu0 %v1270_v8  ;;  %v1388_v17 = vadd.f32 %v1387_v11, %v1386_v7 }
 0x222   :  { %4155 = vmatpush3.msra.mxu0 %v1270_v8  ;;  %v1757_v8 = vrot.slane %v1756_v4, 1 }
 0x223   :  { %4156 = vmatprep.subr.mxu0 %v1269_v9  ;;  %v1389_v19 = vrot.slane %v1388_v17, 2 }
 0x224   :  { %4157 = vmatpush3.msra.mxu0 %v1269_v9  ;;  %v1937_v9 = vadd.f32 %v1936_v5, %v1935_v2  ;;  %v1758_v7 = vadd.f32 %v1757_v8, %v1756_v4 }
 0x225   :  { %4159 = vmatmul.mubr.msk.f32.vlgmr.msra.gmra.mxu0 %vm127_vm1, %v1240_v10  ;;  %4172 = vmatprep.subr.mxu0 %v4387_v50  ;;  %v1390_v23 = vadd.f32 %v1389_v19, %v1388_v17 }
 0x226   :  { %4161 = vmatprep.mubr.msk.f32.mxu0 %vm127_vm1, %v1241_v40  ;;  %4173 = vmatpush3.xpose.msk.msra.mxu0 %vm1483_vm8, %v1248_v46  ;;  %v1938_v11 = vrot.slane %v1937_v9, 1  ;;  %v1759_v19 = vmul.f32 0.125, %v1758_v7  ;;  %v1253_v46 = vld [vmem:[%s5361_s28 + $0x40] sm:$0xff] }
 0x227   :  { %v1391_v32 = vrot.slane %v1390_v23, 1  ;;  %4174 = vmatprep.subr.mxu0 %v4387_v50 }
 0x228   :  { %v1939_v22 = vadd.f32 %v1938_v11, %v1937_v9 }
 0x229   :  { %v1392_v35 = vadd.f32 %v1391_v32, %v1390_v23  ;;  %4162 = vmatmul.mubr.msk.f32.gmra.mxu0 %vm127_vm1, %v1242_v1 }
 0x22a   :  { %4175 = vmatpush3.xpose.msk.msra.mxu0 %vm1483_vm8, %v1247_v51  ;;  %4164 = vmatprep.mubr.msk.f32.mxu0 %vm127_vm1, %v4949_v54  ;;  %v1940_v32 = vmul.f32 0.125, %v1939_v22  ;;  %v1257_v51 = vld [vmem:[%s5361_s28 + $0x60] sm:$0xff] }
 0x22b   :  { %v1394_v38 = vmul.f32 0.125, %v1392_v35  ;;  %4176 = vmatprep.subr.mxu0 %v4387_v50 }
 0x22d   :  { %4165 = vmatmul.mubr.msk.f32.gmra.mxu0 %vm127_vm1, %v4957_v55 }
 0x22e   :  { %4177 = vmatpush3.xpose.msk.msra.mxu0 %vm1483_vm8, %v1246_v42  ;;  %4180 = vmatprep.mubr.msk.f32.mxu0 %vm4388_vm3, %v4387_v50 }
 0x22f   :  { %4178 = vmatprep.subr.mxu0 %v4387_v50 }
 0x232   :  { %4179 = vmatpush3.xpose.msk.msra.mxu0 %vm1483_vm8, %v1245_v48 }
 0x233   :  { %4199 = vmatprep.subr.mxu0 %v4387_v50 }
 0x2dd   :  { %v4898_v27 = vpop.f32.mrf.mxu0 }
 0x2df   :  { %v4149_v34 = vpop.f32.mrf.mxu0 }
 0x2e5   :  { %v4160_v37 = vpop.f32.mrf.mxu0 }
 0x2e7   :  { %v1357_v53 = vpop.f32.mrf.mxu0 }
 0x2e8   :  { %4168 = vmatpush3.xpose.msk.msra.mxu1 %vm127_vm1, %v1357_v53 }
 0x2e9   :  { %4183 = vmatprep.subr.mxu1 %v4387_v50  ;;  %v4163_v10 = vpop.f32.mrf.mxu0 }
 0x2eb   :  { %4170 = vmatmul.mubr.msk.f32.vlgmr.msra.gmra.mxu1 %vm127_vm1, %v1394_v38  ;;  %v1367_v18 = vpop.f32.mrf.mxu0 }
 0x2ec   :  { %4184 = vmatpush3.xpose.msk.msra.mxu1 %vm127_vm1, %v4160_v37  ;;  %4185 = vmatprep.mubr.msk.f32.mxu1 %vm4388_vm3, %v4387_v50 }
 0x2ed   :  { %4188 = vmatprep.subr.mxu1 %v4387_v50  ;;  %v4996_v33 = vpop.f32.mrf.mxu0 }
 0x2ef   :  { %4186 = vmatmul.mubr.msk.f32.vlgmr.msra.gmra.mxu1 %vm127_vm1, %v1578_v0  ;;  %v4998_v34 = vpop.f32.mrf.mxu0 }
 0x2f0   :  { %4196 = vmatprep.mubr.msk.f32.mxu1 %vm4388_vm3, %v4387_v50  ;;  %4189 = vmatpush3.xpose.msk.msra.mxu1 %vm1483_vm8, %v1252_v49  ;;  %v1258_v49 = vld [vmem:[%s5361_s28 + $0x68] sm:$0xff] }
 0x2f1   :  { %4190 = vmatprep.subr.mxu1 %v4387_v50 }
 0x2f4   :  { %4191 = vmatpush3.xpose.msk.msra.mxu1 %vm1483_vm8, %v1251_v52  ;;  %v2114_v52 = vsel %vm127_vm1, %v4949_v54, 0.0 }
 0x2f5   :  { %4192 = vmatprep.subr.mxu1 %v4387_v50  ;;  %v2115_v42 = vrot.slane %v2114_v52, 4 }
 0x2f7   :  { %v2116_v48 = vadd.f32 %v2115_v42, %v2114_v52 }
 0x2f8   :  { %4193 = vmatpush3.xpose.msk.msra.mxu1 %vm1483_vm8, %v1250_v44  ;;  %v2295_v44 = vsel %vm127_vm1, %v4957_v55, 0.0 }
 0x2f9   :  { %4194 = vmatprep.subr.mxu1 %v4387_v50  ;;  %v2117_v58 = vrot.slane %v2116_v48, 2 }
 0x2fb   :  { %v2118_v61 = vadd.f32 %v2117_v58, %v2116_v48 }
 0x2fc   :  { %4195 = vmatpush3.xpose.msk.msra.mxu1 %vm1483_vm8, %v1249_v56  ;;  %v2296_v56 = vrot.slane %v2295_v44, 4 }
 0x2fd   :  { %4215 = vmatprep.subr.mxu1 %v4387_v50  ;;  %v2119_v63 = vrot.slane %v2118_v61, 1 }
 0x2fe   :  { %v2297_v59 = vadd.f32 %v2296_v56, %v2295_v44  ;;  %v2561_v56 = vld [vmem:[%s5314_s20] sm:$0xff] }
 0x3ab   :  { %v1467_v6 = vpop.f32.mrf.mxu1 }
 0x3ac   :  { %v1472_v13 = vsel %vm1471_vm7, %v1467_v6, -inf }
 0x3ad   :  { %1473 = vmax.xlane.f32.xlu0 %v1472_v13  ;;  %v4171_v14 = vpop.f32.mrf.mxu1 }
 0x3af   :  { %v1651_v15 = vpop.f32.mrf.mxu1 }
 0x3b0   :  { %v1655_v16 = vsel %vm1471_vm7, %v1651_v15, -inf }
 0x3b1   :  { %1656 = vmax.xlane.f32.xlu0 %v1655_v16  ;;  %v4187_v20 = vpop.f32.mrf.mxu1 }
 0x436   :  { %v1474_v21 = vpop.xlane.xlu0 %1473 }
 0x437   :  { %v1475_v24 = vsub.f32 %v1467_v6, %v1474_v21 }
 0x439   :  { %v1476_v25 = vmul.f32 1.442695, %v1475_v24 }
 0x43a   :  { %v1657_v28 = vpop.xlane.xlu0 %1656 }
 0x43b   :  { %4363 = vpow2.f32 %v1476_v25  ;;  %v1658_v29 = vsub.f32 %v1651_v15, %v1657_v28 }
 0x43d   :  { %v1659_v30 = vmul.f32 1.442695, %v1658_v29 }
 0x43f   :  { %4365 = vpow2.f32 %v1659_v30  ;;  %v1256_v30 = vld [vmem:[%s5361_s28 + $0x58] sm:$0xff] }
 0x448   :  { %v4364_v31 = vpop.eup %4363 }
 0x449   :  { %v1478_v41 = vsel %vm1471_vm7, %v4364_v31, 0.0 }
 0x44a   :  { %1479 = vadd.xlane.f32.xlu1 %v1478_v41  ;;  %v1260_v41 = vld [vmem:[%s5361_s28 + $0x78] sm:$0xff] }
 0x44c   :  { %v4366_v43 = vpop.eup %4365 }
 0x44d   :  { %v1661_v45 = vsel %vm1471_vm7, %v4366_v43, 0.0 }
 0x44e   :  { %1662 = vadd.xlane.f32.xlu1 %v1661_v45  ;;  %v1259_v45 = vld [vmem:[%s5361_s28 + $0x70] sm:$0xff] }
 0x4d3   :  { %v1480_v62 = vpop.xlane.xlu1 %1479 }
 0x4d4   :  { %4367 = vrcp.f32 %v1480_v62  ;;  %v2298_v62 = vrot.slane %v2297_v59, 2 }
 0x4d6   :  { %v2299_v2 = vadd.f32 %v2298_v62, %v2297_v59  ;;  %v2790_v62 = vld [vmem:[%s5317_s21 + $0x8] sm:$0xff] }
 0x4d7   :  { %v1663_v3 = vpop.xlane.xlu1 %1662 }
 0x4d8   :  { %4369 = vrcp.f32 %v1663_v3  ;;  %v2120_v3 = vadd.f32 %v2119_v63, %v2118_v61  ;;  %v2300_v4 = vrot.slane %v2299_v2, 1  ;;  %v3748_v63 = vld [vmem:[%s5318_s14] ss:$0 sm:$0xff] }
 0x4da   :  { %v2121_v8 = vmul.f32 0.125, %v2120_v3  ;;  %v2301_v9 = vadd.f32 %v2300_v4, %v2299_v2  ;;  %v2714_v2 = vld [vmem:[%s5319_s5] sm:$0xf]  ;;  %v2877_v4 = vld [vmem:[%s5317_s21 + $0x18] sm:$0xff] }
 0x4db   :  { %v2789_v3 = vld [vmem:[%s5317_s21] sm:$0xff] }
 0x4dc   :  { %v2302_v7 = vmul.f32 0.125, %v2301_v9  ;;  %v2876_v9 = vld [vmem:[%s5317_s21 + $0x10] sm:$0xff] }
 0x4e1   :  { %v4368_v47 = vpop.eup %4367 }
 0x4e2   :  { %v1482_v17 = vmul.f32 %v4368_v47, %v4364_v31  ;;  %v1255_v31 = vld [vmem:[%s5361_s28 + $0x50] sm:$0xff] }
 0x4e4   :  { %4181 = vmatmul.mubr.msk.f32.vlgmr.msra.gmra.mxu0 %vm1483_vm8, %v1482_v17 }
 0x4e5   :  { %v4370_v23 = vpop.eup %4369  ;;  %4200 = vmatpush3.xpose.msk.msra.mxu0 %vm127_vm1, %v1367_v18  ;;  %4201 = vmatprep.mubr.msk.f32.mxu0 %vm4388_vm3, %v4387_v50 }
 0x4e6   :  { %v1665_v26 = vmul.f32 %v4370_v23, %v4366_v43  ;;  %4204 = vmatprep.subr.mxu0 %v4387_v50  ;;  %v1254_v43 = vld [vmem:[%s5361_s28 + $0x48] sm:$0xff] }
 0x4e8   :  { %4197 = vmatmul.mubr.msk.f32.vlgmr.msra.gmra.mxu1 %vm1483_vm8, %v1665_v26  ;;  %4202 = vmatmul.mubr.msk.f32.vlgmr.msra.gmra.mxu0 %vm127_vm1, %v1759_v19 }
 0x4e9   :  { %4216 = vmatpush3.xpose.msk.msra.mxu1 %vm127_vm1, %v4163_v10  ;;  %4217 = vmatprep.mubr.msk.f32.mxu1 %vm4388_vm3, %v4387_v50 }
 0x4ea   :  { %4220 = vmatprep.subr.mxu1 %v4387_v50  ;;  %4212 = vmatprep.mubr.msk.f32.mxu0 %vm4388_vm3, %v4387_v50 }
 0x4eb   :  { %4205 = vmatpush3.xpose.msk.msra.mxu0 %vm1483_vm8, %v1256_v30 }
 0x4ec   :  { %4218 = vmatmul.mubr.msk.f32.vlgmr.msra.gmra.mxu1 %vm127_vm1, %v1940_v32  ;;  %4206 = vmatprep.subr.mxu0 %v4387_v50 }
 0x4ed   :  { %4228 = vmatprep.mubr.msk.f32.mxu1 %vm4388_vm3, %v4387_v50  ;;  %4221 = vmatpush3.xpose.msk.msra.mxu1 %vm1483_vm8, %v1260_v41 }
 0x4ee   :  { %4222 = vmatprep.subr.mxu1 %v4387_v50 }
 0x4ef   :  { %4207 = vmatpush3.xpose.msk.msra.mxu0 %vm1483_vm8, %v1255_v31 }
 0x4f0   :  { %4208 = vmatprep.subr.mxu0 %v4387_v50 }
 0x4f1   :  { %4223 = vmatpush3.xpose.msk.msra.mxu1 %vm1483_vm8, %v1259_v45  ;;  %v2479_v45 = vld [vmem:[%s5313_s18 + $0x10] sm:$0xff] }
 0x4f2   :  { %4224 = vmatprep.subr.mxu1 %v4387_v50 }
 0x4f3   :  { %4209 = vmatpush3.xpose.msk.msra.mxu0 %vm1483_vm8, %v1254_v43  ;;  %v2480_v43 = vld [vmem:[%s5313_s18 + $0x18] sm:$0xff] }
 0x4f4   :  { %4210 = vmatprep.subr.mxu0 %v4387_v50 }
 0x4f5   :  { %4225 = vmatpush3.xpose.msk.msra.mxu1 %vm1483_vm8, %v1258_v49  ;;  %v2477_v49 = vld [vmem:[%s5313_s18] sm:$0xff] }
 0x4f6   :  { %4226 = vmatprep.subr.mxu1 %v4387_v50 }
 0x4f7   :  { %4211 = vmatpush3.xpose.msk.msra.mxu0 %vm1483_vm8, %v1253_v46  ;;  %v2478_v46 = vld [vmem:[%s5313_s18 + $0x8] sm:$0xff] }
 0x4f8   :  { %4231 = vmatprep.subr.mxu0 %v4387_v50 }
 0x4f9   :  { %4227 = vmatpush3.xpose.msk.msra.mxu1 %vm1483_vm8, %v1257_v51 }
 0x4fa   :  { %4247 = vmatprep.subr.mxu1 %v4387_v50 }
 0x5a4   :  { %v1565_v35 = vpop.f32.mrf.mxu0 }
 0x5a5   :  { %1570 = vst.msk [vmem:[%s5362_s26] sm:$0x1] %vm1569_vm9, %v1565_v35 }
 0x5a6   :  { %v4182_v36 = vpop.f32.mrf.mxu0 }
 0x5a8   :  { %v1747_v37 = vpop.f32.mrf.mxu1  ;;  %v1832_v38 = vpop.f32.mrf.mxu0 }
 0x5a9   :  { %1751 = vst.msk [vmem:[%s5362_s26 + $0x1] sm:$0x1] %vm1569_vm9, %v1747_v37  ;;  %v1836_v39 = vsel %vm1471_vm7, %v1832_v38, -inf }
 0x5aa   :  { %v4198_v53 = vpop.f32.mrf.mxu1  ;;  %1837 = vmax.xlane.f32.xlu0 %v1836_v39  ;;  %v4203_v0 = vpop.f32.mrf.mxu0 }
 0x5ac   :  { %v2013_v40 = vpop.f32.mrf.mxu1 }
 0x5ad   :  { %v2017_v1 = vsel %vm1471_vm7, %v2013_v40, -inf }
 0x5ae   :  { %2018 = vmax.xlane.f32.xlu1 %v2017_v1  ;;  %v4219_v6 = vpop.f32.mrf.mxu1 }
 0x5af   :  { %v1264_v6 = vld [vmem:[%s5361_s28 + $0x98] sm:$0xff] }
 0x633   :  { %v1838_v13 = vpop.xlane.xlu0 %1837 }
 0x634   :  { %v1839_v14 = vsub.f32 %v1832_v38, %v1838_v13  ;;  %v1263_v13 = vld [vmem:[%s5361_s28 + $0x90] sm:$0xff] }
 0x636   :  { %v1840_v15 = vmul.f32 1.442695, %v1839_v14  ;;  %v1268_v14 = vld [vmem:[%s5361_s28 + $0xb8] sm:$0xff] }
 0x637   :  { %v2019_v16 = vpop.xlane.xlu1 %2018 }
 0x638   :  { %4371 = vpow2.f32 %v1840_v15  ;;  %v2020_v20 = vsub.f32 %v2013_v40, %v2019_v16  ;;  %v1262_v15 = vld [vmem:[%s5361_s28 + $0x88] sm:$0xff]  ;;  %v1267_v16 = vld [vmem:[%s5361_s28 + $0xb0] sm:$0xff] }
 0x63a   :  { %v2021_v21 = vmul.f32 1.442695, %v2020_v20  ;;  %v1261_v20 = vld [vmem:[%s5361_s28 + $0x80] sm:$0xff] }
 0x63c   :  { %4373 = vpow2.f32 %v2021_v21  ;;  %v1266_v21 = vld [vmem:[%s5361_s28 + $0xa8] sm:$0xff] }
 0x645   :  { %v4372_v24 = vpop.eup %4371 }
 0x646   :  { %v1842_v25 = vsel %vm1471_vm7, %v4372_v24, 0.0 }
 0x647   :  { %1843 = vadd.xlane.f32.xlu0 %v1842_v25 }
 0x649   :  { %v4374_v28 = vpop.eup %4373 }
 0x64a   :  { %v2023_v29 = vsel %vm1471_vm7, %v4374_v28, 0.0 }
 0x64b   :  { %2024 = vadd.xlane.f32.xlu1 %v2023_v29 }
 0x6d0   :  { %v1844_v57 = vpop.xlane.xlu0 %1843 }
 0x6d1   :  { %4375 = vrcp.f32 %v1844_v57  ;;  %v3825_v57 = vld [vmem:[%s5315_s19] ss:$0 sm:$0xff] }
 0x6d4   :  { %v2025_v60 = vpop.xlane.xlu1 %2024 }
 0x6d5   :  { %4377 = vrcp.f32 %v2025_v60  ;;  %v2637_v60 = vld [vmem:[%s5316_s4] sm:$0xf] }
 0x6de   :  { %v4376_v5 = vpop.eup %4375 }
 0x6df   :  { %v1846_v54 = vmul.f32 %v4376_v5, %v4372_v24  ;;  %v1265_v24 = vld [vmem:[%s5361_s28 + $0xa0] sm:$0xff]  ;;  %v661_v5 = vadd.f32 %v3748_v63, %v4859_v12  ;;  %v2878_v12 = vld [vmem:[%s5321_s23 + $0x10] sm:$0xff] }
 0x6e1   :  { %4213 = vmatmul.mubr.msk.f32.vlgmr.msra.gmra.mxu0 %vm1483_vm8, %v1846_v54  ;;  %v3775_v54 = vld [vmem:[%s5320_s16] ss:$0 sm:$0xff] }
 0x6e2   :  { %v4378_v55 = vpop.eup %4377  ;;  %4232 = vmatpush3.xpose.msk.msra.mxu0 %vm127_vm1, %v4998_v34  ;;  %4233 = vmatprep.mubr.msk.f32.mxu0 %vm4388_vm3, %v4387_v50 }
 0x6e3   :  { %v2027_v10 = vmul.f32 %v4378_v55, %v4374_v28  ;;  %4236 = vmatprep.subr.mxu0 %v4387_v50  ;;  %v1236_v55 = vadd.f32 %v3775_v54, %v4898_v27  ;;  %v2791_v27 = vld [vmem:[%s5321_s23] sm:$0xff] }
 0x6e5   :  { %4229 = vmatmul.mubr.msk.f32.vlgmr.msra.gmra.mxu1 %vm1483_vm8, %v2027_v10  ;;  %4234 = vmatmul.mubr.msk.f32.vlgmr.msra.gmra.mxu0 %vm127_vm1, %v2121_v8  ;;  %v2879_v8 = vld [vmem:[%s5321_s23 + $0x18] sm:$0xff]  ;;  %v2792_v10 = vld [vmem:[%s5321_s23 + $0x8] sm:$0xff] }
 0x6e6   :  { %4248 = vmatpush3.xpose.msk.msra.mxu1 %vm127_vm1, %v4996_v33  ;;  %4249 = vmatprep.mubr.msk.f32.mxu1 %vm4388_vm3, %v4387_v50 }
 0x6e7   :  { %4252 = vmatprep.subr.mxu1 %v4387_v50  ;;  %4244 = vmatprep.mubr.msk.f32.mxu0 %vm4388_vm3, %v4387_v50 }
 0x6e8   :  { %4237 = vmatpush3.xpose.msk.msra.mxu0 %vm1483_vm8, %v1264_v6 }
 0x6e9   :  { %4250 = vmatmul.mubr.msk.f32.vlgmr.msra.gmra.mxu1 %vm127_vm1, %v2302_v7  ;;  %4238 = vmatprep.subr.mxu0 %v4387_v50  ;;  %v3096_v7 = vmul.f32 %v2879_v8, %v2879_v8 }
 0x6ea   :  { %4260 = vmatprep.mubr.msk.f32.mxu1 %vm4388_vm3, %v4387_v50  ;;  %4253 = vmatpush3.xpose.msk.msra.mxu1 %vm1483_vm8, %v1268_v14 }
 0x6eb   :  { %4254 = vmatprep.subr.mxu1 %v4387_v50 }
 0x6ec   :  { %4239 = vmatpush3.xpose.msk.msra.mxu0 %vm1483_vm8, %v1263_v13 }
 0x6ed   :  { %4240 = vmatprep.subr.mxu0 %v4387_v50 }
 0x6ee   :  { %4255 = vmatpush3.xpose.msk.msra.mxu1 %vm1483_vm8, %v1267_v16 }
 0x6ef   :  { %4256 = vmatprep.subr.mxu1 %v4387_v50 }
 0x6f0   :  { %4241 = vmatpush3.xpose.msk.msra.mxu0 %vm1483_vm8, %v1262_v15 }
 0x6f1   :  { %4242 = vmatprep.subr.mxu0 %v4387_v50 }
 0x6f2   :  { %4257 = vmatpush3.xpose.msk.msra.mxu1 %vm1483_vm8, %v1266_v21 }
 0x6f3   :  { %4258 = vmatprep.subr.mxu1 %v4387_v50 }
 0x6f4   :  { %4243 = vmatpush3.xpose.msk.msra.mxu0 %vm1483_vm8, %v1261_v20 }
 0x6f5   :  { %4263 = vmatprep.subr.mxu0 %v4387_v50 }
 0x6f6   :  { %4259 = vmatpush3.xpose.msk.msra.mxu1 %vm1483_vm8, %v1265_v24 }
 0x6f7   :  { %4274 = vmatprep.subr.mxu1 %v4387_v50 }
 0x7a1   :  { %v1928_v11 = vpop.f32.mrf.mxu0 }
 0x7a2   :  { %1932 = vst.msk [vmem:[%s5362_s26 + $0x2] sm:$0x1] %vm1569_vm9, %v1928_v11  ;;  %v3095_v11 = vmul.f32 %v2878_v12, %v2878_v12 }
 0x7a3   :  { %v4214_v47 = vpop.f32.mrf.mxu0 }
 0x7a4   :  { %v2875_v47 = vmul.f32 %v2792_v10, %v2792_v10 }
 0x7a5   :  { %v2109_v17 = vpop.f32.mrf.mxu1  ;;  %v2194_v18 = vpop.f32.mrf.mxu0 }
 0x7a6   :  { %2113 = vst.msk [vmem:[%s5362_s26 + $0x3] sm:$0x1] %vm1569_vm9, %v2109_v17  ;;  %v2198_v19 = vsel %vm1471_vm7, %v2194_v18, -inf  ;;  %v3094_v17 = vmul.f32 %v1236_v55, %v1236_v55 }
 0x7a7   :  { %v4230_v22 = vpop.f32.mrf.mxu1  ;;  %2199 = vmax.xlane.f32.xlu0 %v2198_v19  ;;  %v4235_v23 = vpop.f32.mrf.mxu0  ;;  %v2873_v19 = vmul.f32 %v661_v5, %v661_v5 }
 0x7a8   :  { %v3243_v22 = vld [vmem:[%s5317_s21 + $0x20] sm:$0xff] }
 0x7a9   :  { %v2375_v26 = vpop.f32.mrf.mxu1  ;;  %v3244_v23 = vld [vmem:[%s5321_s23 + $0x20] sm:$0xff] }
 0x7aa   :  { %v2379_v32 = vsel %vm1471_vm7, %v2375_v26, -inf }
 0x7ab   :  { %2380 = vmax.xlane.f32.xlu1 %v2379_v32  ;;  %v4251_v33 = vpop.f32.mrf.mxu1  ;;  %v3391_v32 = vmul.f32 %v3244_v23, %v3244_v23 }
 0x830   :  { %v2200_v34 = vpop.xlane.xlu0 %2199 }
 0x831   :  { %v2201_v35 = vsub.f32 %v2194_v18, %v2200_v34  ;;  %v2874_v18 = vmul.f32 %v2791_v27, %v2791_v27 }
 0x833   :  { %v2202_v36 = vmul.f32 1.442695, %v2201_v35  ;;  %v3466_v35 = vld [vmem:[%s5317_s21 + $0x28] sm:$0xff] }
 0x834   :  { %v2381_v37 = vpop.xlane.xlu1 %2380 }
 0x835   :  { %4379 = vpow2.f32 %v2202_v36  ;;  %v2382_v38 = vsub.f32 %v2375_v26, %v2381_v37  ;;  %v33_v26 = vstv %s5322_s22  ;;  %v3467_v36 = vld [vmem:[%s5321_s23 + $0x28] sm:$0xff] }
 0x836   :  { %34 = vst [vmem:[#allocation3] sm:$0x1] %v33_v26 }
 0x837   :  { %v2383_v39 = vmul.f32 1.442695, %v2382_v38 }
 0x839   :  { %4381 = vpow2.f32 %v2383_v39 }
 0x842   :  { %v4380_v53 = vpop.eup %4379 }
 0x843   :  { %v2204_v0 = vsel %vm1471_vm7, %v4380_v53, 0.0 }
 0x844   :  { %2205 = vadd.xlane.f32.xlu0 %v2204_v0  ;;  %v3833_v0 = vld [vmem:[#allocation3] ss:$0 sm:$0xff] }
 0x846   :  { %v4382_v40 = vpop.eup %4381 }
 0x847   :  { %v2385_v1 = vsel %vm1471_vm7, %v4382_v40, 0.0 }
 0x848   :  { %2386 = vadd.xlane.f32.xlu1 %v2385_v1 }
 0x8cd   :  { %v2206_v25 = vpop.xlane.xlu0 %2205 }
 0x8ce   :  { %4383 = vrcp.f32 %v2206_v25 }
 0x8d1   :  { %v2387_v28 = vpop.xlane.xlu1 %2386 }
 0x8d2   :  { %4385 = vrcp.f32 %v2387_v28 }
 0x8db   :  { %v4384_v29 = vpop.eup %4383 }
 0x8dc   :  { %v2208_v30 = vmul.f32 %v4384_v29, %v4380_v53 }
 0x8de   :  { %4245 = vmatmul.mubr.msk.f32.vlgmr.msra.gmra.mxu0 %vm1483_vm8, %v2208_v30 }
 0x8df   :  { %v4386_v31 = vpop.eup %4385  ;;  %4271 = vmatprep.mubr.msk.f32.mxu0 %vm4388_vm3, %v4387_v50  ;;  %4264 = vmatpush3.msra.mxu0 %v2480_v43 }
 0x8e0   :  { %v2389_v41 = vmul.f32 %v4386_v31, %v4382_v40  ;;  %4265 = vmatprep.subr.mxu0 %v4387_v50  ;;  %v3614_v40 = vmul.f32 %v3467_v36, %v3467_v36 }
 0x8e1   :  { %4266 = vmatpush3.msra.mxu0 %v2479_v45 }
 0x8e2   :  { %4261 = vmatmul.mubr.msk.f32.vlgmr.msra.gmra.mxu1 %vm1483_vm8, %v2389_v41  ;;  %4267 = vmatprep.subr.mxu0 %v4387_v50 }
 0x8e3   :  { %4276 = vmatprep.mubr.msk.f32.mxu1 %vm4388_vm3, %v4387_v50  ;;  %4268 = vmatpush3.msra.mxu0 %v2478_v46 }
 0x8e4   :  { %4269 = vmatprep.subr.mxu0 %v4387_v50  ;;  %4275 = vmatpush3.msra.mxu1 %v2561_v56 }
 0x8e5   :  { %4270 = vmatpush3.msra.mxu0 %v2477_v49  ;;  %4284 = vmatprep.subr.mxu1 %v4387_v50 }
 0x8e6   :  { %4279 = vmatprep.subr.mxu0 %v4387_v50 }
 0x99e   :  { %v2290_v51 = vpop.f32.mrf.mxu0 }
 0x99f   :  { %2294 = vst.msk [vmem:[%s5362_s26 + $0x4] sm:$0x1] %vm1569_vm9, %v2290_v51 }
 0x9a0   :  { %v4246_v52 = vpop.f32.mrf.mxu0 }
 0x9a2   :  { %v2471_v42 = vpop.f32.mrf.mxu1 }
 0x9a3   :  { %2475 = vst.msk [vmem:[%s5362_s26 + $0x5] sm:$0x1] %vm1569_vm9, %v2471_v42 }
 0x9a4   :  { %v4262_v44 = vpop.f32.mrf.mxu1 }
 0x9aa   :  { %v2476_v48 = vld [vmem:[%s5362_s26] sm:$0x3f] }
 0x9ab   :  { %4272 = vmatmul.mubr.msk.f32.vlgmr.msra.gmra.mxu0 %vm127_vm1, %v2476_v48 }
 0x9ac   :  { %4281 = vmatprep.mubr.msk.f32.mxu0 %vm4388_vm3, %v4387_v50 }
 0xa6b   :  { %v2557_v58 = vpop.f32.mrf.mxu0 }
 0xa6c   :  { %v2558_v59 = vadd.f32 %v3825_v57, %v2557_v58 }
 0xa6d   :  { %v4273_v61 = vpop.f32.mrf.mxu0 }
 0xa6e   :  { %4277 = vmatmul.mubr.msk.f32.vlgmr.msra.gmra.mxu1 %vm1483_vm8, %v2558_v59  ;;  %4280 = vmatpush3.msk.msra.mxu0 %vm370_vm2, %v2558_v59 }
 0xa6f   :  { %4285 = vmatpush3.msk.msra.mxu1 %vm370_vm2, %v2558_v59  ;;  %4282 = vmatmul.mubr.msk.f32.vlgmr.msra.gmra.mxu0 %vm2638_vm10, %v2637_v60 }
 0xa70   :  { %4289 = vmatprep.subr.mxu0 %v4387_v50  ;;  %4286 = vmatprep.mubr.msk.f32.mxu1 %vm4388_vm3, %v4387_v50 }
 0xa71   :  { %4290 = vmatpush3.msra.mxu0 %v2790_v62  ;;  %4293 = vmatprep.mubr.msk.f32.mxu0 %vm4388_vm3, %v4387_v50 }
 0xa72   :  { %4291 = vmatprep.subr.mxu0 %v4387_v50  ;;  %4287 = vmatmul.mubr.msk.f32.vlgmr.msra.gmra.mxu1 %vm2638_vm10, %v2714_v2 }
 0xa73   :  { %4292 = vmatpush3.msra.mxu0 %v2789_v3  ;;  %4296 = vmatprep.subr.mxu1 %v4387_v50 }
 0xa74   :  { %4294 = vmatmul.mubr.msk.f32.vlgmr.msra.gmra.mxu0 %vm538_vm5, %v661_v5  ;;  %4297 = vmatpush3.msra.mxu1 %v2877_v4 }
 0xa75   :  { %4303 = vmatprep.subr.mxu0 %v4387_v50  ;;  %4298 = vmatprep.subr.mxu1 %v4387_v50 }
 0xa76   :  { %4304 = vmatpush3.msra.mxu0 %v2879_v8  ;;  %4299 = vmatpush3.msra.mxu1 %v2876_v9 }
 0xa77   :  { %4300 = vmatprep.mubr.msk.f32.mxu1 %vm4388_vm3, %v4387_v50  ;;  %4305 = vmatprep.subr.mxu0 %v4387_v50 }
 0xa78   :  { %4301 = vmatmul.mubr.msk.f32.vlgmr.msra.gmra.mxu1 %vm538_vm5, %v1236_v55  ;;  %4306 = vmatpush3.msra.mxu0 %v2878_v12 }
 0xa79   :  { %4307 = vmatprep.mubr.msk.f32.mxu0 %vm4388_vm3, %v4387_v50  ;;  %4310 = vmatprep.subr.mxu1 %v4387_v50 }
 0xa7a   :  { %4308 = vmatmul.mubr.msk.f32.vlgmr.msra.gmra.mxu0 %vm538_vm5, %v1236_v55  ;;  %4311 = vmatpush3.msra.mxu1 %v2792_v10  ;;  %v3697_v55 = vld [vmem:[%s5324_s6] sm:$0xf] }
 0xa7b   :  { %4317 = vmatprep.subr.mxu0 %v4387_v50  ;;  %4312 = vmatprep.subr.mxu1 %v4387_v50 }
 0xa7c   :  { %4318 = vmatpush3.msra.mxu0 %v3096_v7  ;;  %4313 = vmatpush3.msra.mxu1 %v2791_v27  ;;  %v3699_v7 = vld [vmem:[%s5325_s7] sm:$0xf] }
 0xa7d   :  { %4314 = vmatprep.mubr.msk.f32.mxu1 %vm4388_vm3, %v4387_v50  ;;  %4319 = vmatprep.subr.mxu0 %v4387_v50 }
 0xa7e   :  { %4315 = vmatmul.mubr.msk.f32.vlgmr.msra.gmra.mxu1 %vm538_vm5, %v661_v5  ;;  %4320 = vmatpush3.msra.mxu0 %v3095_v11  ;;  %v3703_v11 = vld [vmem:[%s5326_s8] sm:$0xf] }
 0xa7f   :  { %4321 = vmatprep.mubr.msk.f32.mxu0 %vm4388_vm3, %v4387_v50  ;;  %4324 = vmatprep.subr.mxu1 %v4387_v50 }
 0xa80   :  { %4322 = vmatmul.mubr.msk.f32.vlgmr.msra.gmra.mxu0 %vm538_vm5, %v3094_v17  ;;  %4325 = vmatpush3.msra.mxu1 %v2875_v47 }
 0xa81   :  { %4326 = vmatprep.subr.mxu1 %v4387_v50  ;;  %4328 = vmatprep.mubr.msk.f32.mxu1 %vm4388_vm3, %v4387_v50 }
 0xa82   :  { %4327 = vmatpush3.msra.mxu1 %v2874_v18  ;;  %4331 = vmatprep.subr.mxu0 %v4387_v50 }
 0xa83   :  { %4329 = vmatmul.mubr.msk.f32.vlgmr.msra.gmra.mxu1 %vm538_vm5, %v2873_v19  ;;  %4336 = vmatprep.subr.mxu1 %v4387_v50 }
 0xa84   :  { %4333 = vmatprep.mubr.msk.f32.mxu0 %vm4388_vm3, %v4387_v50  ;;  %4338 = vmatprep.mubr.msk.f32.mxu1 %vm4388_vm3, %v4387_v50 }
 0xa85   :  { %4332 = vmatpush3.msra.mxu0 %v3243_v22  ;;  %4337 = vmatpush3.msra.mxu1 %v3244_v23 }
 0xa86   :  { %4341 = vmatprep.subr.mxu0 %v4387_v50  ;;  %4346 = vmatprep.subr.mxu1 %v4387_v50 }
 0xb2e   :  { %v2631_v33 = vpop.f32.mrf.mxu1 }
 0xb2f   :  { %2636 = vst.msk [vmem:[%s5323_s27] sm:$0x3f] %vm2635_vm11, %v2631_v33  ;;  %v2710_v34 = vpop.f32.mrf.mxu0 }
 0xb30   :  { %v4278_v37 = vpop.f32.mrf.mxu1  ;;  %4334 = vmatmul.mubr.msk.f32.vlgmr.msra.gmra.mxu0 %vm1483_vm8, %v2710_v34  ;;  %4339 = vmatmul.mubr.msk.f32.vlgmr.msra.gmra.mxu1 %vm1483_vm8, %v2710_v34  ;;  %v3390_v39 = vmul.f32 %v2710_v34, %v2710_v34 }
 0xb31   :  { %v4283_v38 = vpop.f32.mrf.mxu0  ;;  %4342 = vmatpush3.msra.mxu0 %v3391_v32  ;;  %4343 = vmatprep.mubr.msk.f32.mxu0 %vm4388_vm3, %v4387_v50 }
 0xb32   :  { %v2784_v53 = vpop.f32.mrf.mxu1  ;;  %4347 = vmatpush3.msra.mxu1 %v3466_v35  ;;  %4348 = vmatprep.mubr.msk.f32.mxu1 %vm4388_vm3, %v4387_v50 }
 0xb33   :  { %4351 = vmatprep.subr.mxu0 %v4387_v50  ;;  %4356 = vmatprep.subr.mxu1 %v4387_v50  ;;  %v3613_v1 = vmul.f32 %v2784_v53, %v2784_v53 }
 0xb34   :  { %v2862_v6 = vpop.f32.mrf.mxu0  ;;  %v4288_v13 = vpop.f32.mrf.mxu1  ;;  %4344 = vmatmul.mubr.msk.f32.vlgmr.msra.gmra.mxu0 %vm1483_vm8, %v3390_v39  ;;  %4349 = vmatmul.mubr.msk.f32.vlgmr.msra.gmra.mxu1 %vm1483_vm8, %v2784_v53 }
 0xb35   :  { %v2872_v14 = vadd.f32 %v3833_v0, %v2862_v6  ;;  %4352 = vmatpush3.msra.mxu0 %v3467_v36  ;;  %4353 = vmatprep.mubr.msk.f32.mxu0 %vm4388_vm3, %v4387_v50 }
 0xb36   :  { %v4295_v15 = vpop.f32.mrf.mxu0  ;;  %4357 = vmatpush3.msra.mxu1 %v3614_v40  ;;  %4358 = vmatprep.mubr.msk.f32.mxu1 %vm4388_vm3, %v4387_v50 }
 0xb38   :  { %v2949_v16 = vpop.f32.mrf.mxu1  ;;  %4354 = vmatmul.mubr.msk.f32.vlgmr.msra.gmra.mxu0 %vm1483_vm8, %v2784_v53  ;;  %4359 = vmatmul.mubr.msk.f32.vlgmr.msra.gmra.mxu1 %vm1483_vm8, %v3613_v1 }
 0xb39   :  { %v2953_v20 = vadd.f32 %v2949_v16, %v2872_v14 }
 0xb3a   :  { %v3020_v21 = vpop.f32.mrf.mxu0  ;;  %v4302_v24 = vpop.f32.mrf.mxu1 }
 0xb3c   :  { %v4309_v25 = vpop.f32.mrf.mxu0 }
 0xb3e   :  { %v3090_v28 = vpop.f32.mrf.mxu1 }
 0xb3f   :  { %v3091_v29 = vadd.f32 %v3090_v28, %v3020_v21 }
 0xb40   :  { %v3166_v30 = vpop.f32.mrf.mxu0  ;;  %v4316_v31 = vpop.f32.mrf.mxu1 }
 0xb42   :  { %v4323_v41 = vpop.f32.mrf.mxu0 }
 0xb43   :  { %v3239_v43 = vpop.f32.mrf.mxu1 }
 0xb44   :  { %v3240_v45 = vadd.f32 %v3239_v43, %v3166_v30 }
 0xb45   :  { %v4330_v46 = vpop.f32.mrf.mxu1 }
 0xbf0   :  { %v3314_v49 = vpop.f32.mrf.mxu0  ;;  %v3385_v51 = vpop.f32.mrf.mxu1 }
 0xbf1   :  { %v3318_v50 = vadd.f32 %v3314_v49, %v2953_v20  ;;  %v3389_v59 = vadd.f32 %v3385_v51, %v3091_v29 }
 0xbf2   :  { %v4335_v52 = vpop.f32.mrf.mxu0  ;;  %v4340_v42 = vpop.f32.mrf.mxu1 }
 0xbf4   :  { %v3461_v44 = vpop.f32.mrf.mxu0  ;;  %v3537_v48 = vpop.f32.mrf.mxu1 }
 0xbf5   :  { %v3541_v56 = vadd.f32 %v3537_v48, %v3318_v50  ;;  %v3465_v62 = vadd.f32 %v3461_v44, %v3240_v45 }
 0xbf6   :  { %v4345_v57 = vpop.f32.mrf.mxu0  ;;  %v4350_v58 = vpop.f32.mrf.mxu1 }
 0xbf8   :  { %v3608_v60 = vpop.f32.mrf.mxu0  ;;  %v3684_v61 = vpop.f32.mrf.mxu1 }
 0xbf9   :  { %v3612_v63 = vadd.f32 %v3608_v60, %v3389_v59  ;;  %v3688_v5 = vadd.f32 %v3684_v61, %v3465_v62 }
 0xbfa   :  { %v4355_v2 = vpop.f32.mrf.mxu0  ;;  %v4360_v3 = vpop.f32.mrf.mxu1 }
 0xbfb   :  { %v3689_v4 = vmul.f32 %v3612_v63, %v3612_v63 }
 0xbfd   :  { %v3690_v54 = vsub.f32 %v3689_v4, %v3688_v5 }
 0xbff   :  { %v3692_v8 = vsel %vm3691_vm12, %v3690_v54, 0.0 }
 0xc00   :  { %3693 = vadd.xlane.f32.xlu0 %v3692_v8 }
 0xc89   :  { %v3694_v9 = vpop.xlane.xlu0 %3693 }
 0xc8a   :  { %v3695_v12 = vmul.f32 0.5, %v3694_v9 }
 0xc8c   :  { %v3696_v10 = vadd.f32 %v3695_v12, %v3541_v56 }
 0xc8e   :  { %v3698_v27 = vadd.f32 %v3697_v55, %v3696_v10 }
 0xc90   :  { %v3700_v47 = vadd.f32 %v3699_v7, %v3698_v27 }
 0xc92   :  { %3702 = vst.msk [vmem:[%s5327_s24] sm:$0xf] %vm3701_vm13, %v3700_v47  ;;  %v3704_v17 = vsub.f32 %v3700_v47, %v3703_v11 }
 0xc94   :  { %v3705_v18 = vmul.f32 %v3704_v17, %v3704_v17 }
 0xc96   :  { %3706 = vst.msk [vmem:[%s5328_s25] sm:$0xf] %vm3701_vm13, %v3705_v18 }

</bundles_post_ra>
